<compile_context>
chip_gen: v6e
topology: v6e:2x2x1
jax: 0.10.0
libtpu: 0.0.40
codegen_flags: <defaults>
</compile_context>

<pallas_src>
import jax
import jax.numpy as jnp
import numpy as np
from jax.experimental import pallas as pl
from jax.experimental.pallas import tpu as pltpu

CONV1_OUT = 20
CONV2_OUT = 40
KSIZE = 5

TILE_M_CONV1 = 512      # layer-1 patches: K=25  -> 4*512*128(lanes)*4B*2buf ~ 2 MiB
TILE_M_CONV2 = 256      # layer-2 patches: K=500 -> 4*256*512(lanes)*4B*2buf ~ 4 MiB
TILE_N_FC = 256
VMEM_LIMIT_BYTES = 32 * 1024 * 1024   # within physical VMEM on v5e/v6e/v7x


# --------------------------------------------------------------------------
# Pallas kernels
# --------------------------------------------------------------------------
def conv_relu_pool_kernel(p_ref, w_ref, b_ref, o_ref):
  """o = maxpool2x2(relu(conv(x) + b)) on one M-tile.

  p_ref: (4, TILE_M, K) im2col patches; leading axis = 2x2 pooling
         sub-position, rows ordered (n, ph, pw), cols ordered (kh, kw, cin).
  w_ref: (K, Cout), b_ref: (1, Cout), o_ref: (TILE_M, Cout).
  """
  s, tm, kk = p_ref.shape
  # One fused MXU matmul for all four pooling branches (single weight push).
  y = jnp.dot(p_ref[...].reshape(s * tm, kk), w_ref[...],
              preferred_element_type=jnp.float32)
  y = y.reshape(s, tm, -1)
  # 2x2 max-pool == elementwise max over the 4 sub-position slices.
  y = jnp.maximum(jnp.maximum(y[0], y[1]), jnp.maximum(y[2], y[3]))
  # bias+ReLU commute with the max (same bias on every branch) -> do once.
  o_ref[...] = jnp.maximum(y + b_ref[...], 0.0)


def fc_head_kernel(x_ref, w1_ref, b1_ref, w2_ref, b2_ref, o_ref):
  """relu(x@w1+b1) -> relu(.@w2+b2) -> log_softmax(dim=1) on one N-tile."""
  h = jnp.dot(x_ref[...], w1_ref[...], preferred_element_type=jnp.float32)
  h = jnp.maximum(h + b1_ref[...], 0.0)
  y = jnp.dot(h, w2_ref[...], preferred_element_type=jnp.float32)
  y = jnp.maximum(y + b2_ref[...], 0.0)
  m = jnp.max(y, axis=-1, keepdims=True)
  lse = jnp.log(jnp.sum(jnp.exp(y - m), axis=-1, keepdims=True)) + m
  o_ref[...] = y - lse


def _compiler_params():
  return pltpu.CompilerParams(dimension_semantics=("parallel",),
                              vmem_limit_bytes=VMEM_LIMIT_BYTES)


# --------------------------------------------------------------------------
# Glue: im2col + pooling split (plain JAX, layout plumbing only)
# --------------------------------------------------------------------------
def _pooled_patches(x_nhwc, k=KSIZE):
  """NHWC -> (4, N*PH*PW, k*k*C) im2col patches split by 2x2 pool position.

  Sub-position index = di*2+dj, rows ordered (n, ph, pw), columns ordered
  (kh, kw, c) -- matching the (kh, kw, cin, cout) weight flattening.
  """
  n, h, w, c = x_nhwc.shape
  ho, wo = h - k + 1, w - k + 1
  assert ho % 2 == 0 and wo % 2 == 0, "2x2 pooling needs even conv output"
  ph, pw = ho // 2, wo // 2
  cols = [x_nhwc[:, kh:kh + ho, kw:kw + wo, :]
          for kh in range(k) for kw in range(k)]
  p = jnp.concatenate(cols, axis=-1)                 # (N, Ho, Wo, k*k*C)
  p = p.reshape(n, ph, 2, pw, 2, k * k * c)
  p = p.transpose(2, 4, 0, 1, 3, 5)                  # (di, dj, N, PH, PW, K)
  return p.reshape(4, n * ph * pw, k * k * c)


def conv_relu_pool_layer(x_nhwc, w_mat, b_row, tile_m_cap):
  """PyTorch-equivalent maxpool2(relu(conv2d_valid_5x5(x))), NHWC in/out."""
  n, h, w, c = x_nhwc.shape
  ho, wo = h - KSIZE + 1, w - KSIZE + 1
  ph, pw = ho // 2, wo // 2
  kk = KSIZE * KSIZE * c
  cout = w_mat.shape[1]
  m = n * ph * pw
  assert w_mat.shape[0] == kk

  patches = _pooled_patches(x_nhwc)                  # (4, M, K)
  tile_m = m if m <= tile_m_cap else tile_m_cap
  grid = (pl.cdiv(m, tile_m),)

  out = pl.pallas_call(
      conv_relu_pool_kernel,
      out_shape=jax.ShapeDtypeStruct((m, cout), jnp.float32),
      grid=grid,
      in_specs=[
          pl.BlockSpec((4, tile_m, kk), lambda i: (0, i, 0)),
          pl.BlockSpec((kk, cout), lambda i: (0, 0)),   # weights stay resident
          pl.BlockSpec((1, cout), lambda i: (0, 0)),
      ],
      out_specs=pl.BlockSpec((tile_m, cout), lambda i: (i, 0)),
      compiler_params=_compiler_params(),
  )(patches, w_mat, b_row)
  return out.reshape(n, ph, pw, cout)                # NHWC, no transpose


def fc_head(x, w1, b1, w2, b2, tile_n_cap=TILE_N_FC):
  n, d = x.shape
  h1 = w1.shape[1]
  nc = w2.shape[1]
  tile_n = n if n <= tile_n_cap else tile_n_cap
  grid = (pl.cdiv(n, tile_n),)
  return pl.pallas_call(
      fc_head_kernel,
      out_shape=jax.ShapeDtypeStruct((n, nc), jnp.float32),
      grid=grid,
      in_specs=[
          pl.BlockSpec((tile_n, d), lambda i: (i, 0)),
          pl.BlockSpec((d, h1), lambda i: (0, 0)),      # resident
          pl.BlockSpec((1, h1), lambda i: (0, 0)),
          pl.BlockSpec((h1, nc), lambda i: (0, 0)),
          pl.BlockSpec((1, nc), lambda i: (0, 0)),
      ],
      out_specs=pl.BlockSpec((tile_n, nc), lambda i: (i, 0)),
      compiler_params=_compiler_params(),
  )(x, w1, b1, w2, b2)


# --------------------------------------------------------------------------
# Parameter repack (once, outside jit) + forward
# --------------------------------------------------------------------------
def prepare_kernel_params(params):
  """One-time repack of PyTorch-layout params into kernel-friendly layouts."""
  w1, b1, w2, b2, fw1, fb1, fw2, fb2 = params

  def conv_mat(w):  # (Cout, Cin, KH, KW) -> (KH*KW*Cin, Cout), (kh,kw,cin) order
    cout, cin, kh, kw = w.shape
    return jnp.transpose(w, (2, 3, 1, 0)).reshape(kh * kw * cin, cout)

  return {
      "c1_w": conv_mat(w1), "c1_b": b1.reshape(1, -1),
      "c2_w": conv_mat(w2), "c2_b": b2.reshape(1, -1),
      "f1_w": fw1.T, "f1_b": fb1.reshape(1, -1),
      "f2_w": fw2.T, "f2_b": fb2.reshape(1, -1),
  }


@jax.jit
def convnet_forward(x_nchw, kp):
  n = x_nchw.shape[0]
  x = jnp.transpose(x_nchw, (0, 2, 3, 1))                            # NHWC
  h = conv_relu_pool_layer(x, kp["c1_w"], kp["c1_b"], TILE_M_CONV1)  # (N,12,12,20)
  h = conv_relu_pool_layer(h, kp["c2_w"], kp["c2_b"], TILE_M_CONV2)  # (N,4,4,40)
  # torch's .view flattens NCHW (c, h, w)-major: tiny transpose at the end.
  flat = jnp.transpose(h, (0, 3, 1, 2)).reshape(n, -1)
  assert flat.shape[1] == kp["f1_w"].shape[0]
  return fc_head(flat, kp["f1_w"], kp["f1_b"], kp["f2_w"], kp["f2_b"])


# --------------------------------------------------------------------------
# Pure-JAX reference for sanity checking
# --------------------------------------------------------------------------
def reference_forward(x, params):
  w1, b1, w2, b2, fw1, fb1, fw2, fb2 = params

  def conv(x, w, b):
    y = jax.lax.conv_general_dilated(
        x, w, window_strides=(1, 1), padding="VALID",
        dimension_numbers=("NCHW", "OIHW", "NCHW"),
        precision=jax.lax.Precision.HIGHEST)
    return y + b.reshape(1, -1, 1, 1)

  def pool(x):
    return jax.lax.reduce_window(x, -jnp.inf, jax.lax.max,
                                 (1, 1, 2, 2), (1, 1, 2, 2), "VALID")

  h = pool(jax.nn.relu(conv(x, w1, b1)))
  h = pool(jax.nn.relu(conv(h, w2, b2)))
  flat = h.reshape(h.shape[0], -1)
  h = jax.nn.relu(flat @ fw1.T + fb1)
  y = jax.nn.relu(h @ fw2.T + fb2)
  return jax.nn.log_softmax(y, axis=1)


def init_params(key):
  ks = jax.random.split(key, 8)

  def u(k, shape, fan_in):
    bound = 1.0 / np.sqrt(fan_in)
    return jax.random.uniform(k, shape, jnp.float32, -bound, bound)

  w1 = u(ks[0], (CONV1_OUT, 1, KSIZE, KSIZE), 1 * 25)
  b1 = u(ks[1], (CONV1_OUT,), 1 * 25)
  w2 = u(ks[2], (CONV2_OUT, CONV1_OUT, KSIZE, KSIZE), CONV1_OUT * 25)
  b2 = u(ks[3], (CONV2_OUT,), CONV1_OUT * 25)
  fw1 = u(ks[4], (120, CONV2_OUT * 4 * 4), CONV2_OUT * 16)
  fb1 = u(ks[5], (120,), CONV2_OUT * 16)
  fw2 = u(ks[6], (10, 120), 120)
  fb2 = u(ks[7], (10,), 120)
  return (w1, b1, w2, b2, fw1, fb1, fw2, fb2)


if __name__ == "__main__":
  key = jax.random.PRNGKey(0)
  pkey, xkey = jax.random.split(key)
  params = init_params(pkey)
  kparams = prepare_kernel_params(params)

  # MNIST-shaped input: the 4*4*40 fc1 fan-in forces 28x28 single-channel.
  # batch=2 -> single block per grid step; batch=16 -> multi-step tiled
  # pipeline including a partial (masked) last block in layer 1.
  for batch in (2, 16):
    x = jax.random.normal(jax.random.fold_in(xkey, batch),
                          (batch, 1, 28, 28), jnp.float32)
    out = jax.block_until_ready(convnet_forward(x, kparams))
    ref = jax.block_until_ready(reference_forward(x, params))
    assert out.shape == (batch, 10), out.shape
    assert bool(jnp.all(jnp.isfinite(out)))
    np.testing.assert_allclose(np.asarray(out), np.asarray(ref),
                               rtol=1e-2, atol=1e-2)
  print("KERNEL_OK")
</pallas_src>

<mosaic_0001>
module attributes {stable_mosaic.version = 11 : i64} {
  func.func @conv_relu_pool_kernel(%arg0: i32, %arg1: memref<4x288x25xf32, #tpu.memory_space<vmem>>, %arg2: memref<25x20xf32, #tpu.memory_space<vmem>>, %arg3: memref<1x20xf32, #tpu.memory_space<vmem>>, %arg4: memref<288x20xf32, #tpu.memory_space<vmem>>) attributes {dimension_semantics = [#tpu.dimension_semantics<parallel>], iteration_bounds = array<i64: 1>, scalar_prefetch = 0 : i64, scratch_operands = 0 : i64, tpu.core_type = #tpu.core_type<tc>, window_params = [{transform_indices = @transform_0, window_bounds = array<i64: 4, 288, 25>}, {pipeline_mode = #tpu.pipeline_mode<synchronous>, transform_indices = @transform_1, window_bounds = array<i64: 25, 20>}, {pipeline_mode = #tpu.pipeline_mode<synchronous>, transform_indices = @transform_2, window_bounds = array<i64: 1, 20>}, {transform_indices = @transform_3, window_bounds = array<i64: 288, 20>}]} {
    %c0 = arith.constant 0 : index
    %c0_0 = arith.constant 0 : index
    %c0_1 = arith.constant 0 : index
    %0 = vector.load %arg1[%c0, %c0_0, %c0_1] : memref<4x288x25xf32, #tpu.memory_space<vmem>>, vector<4x288x25xf32>
    %1 = vector.shape_cast %0 : vector<4x288x25xf32> to vector<1152x25xf32>
    %c0_2 = arith.constant 0 : index
    %c0_3 = arith.constant 0 : index
    %2 = vector.load %arg2[%c0_2, %c0_3] : memref<25x20xf32, #tpu.memory_space<vmem>>, vector<25x20xf32>
    %cst = arith.constant dense<0.000000e+00> : vector<1152x20xf32>
    %3 = tpu.matmul %1, %2, %cst {dimension_numbers = #tpu.dot_dimension_numbers<[1], [0], [0], [1], [0, 0, 1, 1], [], []>} : vector<1152x25xf32>, vector<25x20xf32>, vector<1152x20xf32> -> vector<1152x20xf32>
    %4 = vector.shape_cast %3 : vector<1152x20xf32> to vector<4x288x20xf32>
    %5 = vector.extract_strided_slice %4 {offsets = [0, 0, 0], sizes = [1, 288, 20], strides = [1, 1, 1]} : vector<4x288x20xf32> to vector<1x288x20xf32>
    %6 = vector.shape_cast %5 : vector<1x288x20xf32> to vector<288x20xf32>
    %7 = vector.extract_strided_slice %4 {offsets = [1, 0, 0], sizes = [1, 288, 20], strides = [1, 1, 1]} : vector<4x288x20xf32> to vector<1x288x20xf32>
    %8 = vector.shape_cast %7 : vector<1x288x20xf32> to vector<288x20xf32>
    %9 = arith.maximumf %6, %8 : vector<288x20xf32>
    %10 = vector.extract_strided_slice %4 {offsets = [2, 0, 0], sizes = [1, 288, 20], strides = [1, 1, 1]} : vector<4x288x20xf32> to vector<1x288x20xf32>
    %11 = vector.shape_cast %10 : vector<1x288x20xf32> to vector<288x20xf32>
    %12 = vector.extract_strided_slice %4 {offsets = [3, 0, 0], sizes = [1, 288, 20], strides = [1, 1, 1]} : vector<4x288x20xf32> to vector<1x288x20xf32>
    %13 = vector.shape_cast %12 : vector<1x288x20xf32> to vector<288x20xf32>
    %14 = arith.maximumf %11, %13 : vector<288x20xf32>
    %15 = arith.maximumf %9, %14 : vector<288x20xf32>
    %c0_4 = arith.constant 0 : index
    %c0_5 = arith.constant 0 : index
    %16 = vector.load %arg3[%c0_4, %c0_5] : memref<1x20xf32, #tpu.memory_space<vmem>>, vector<1x20xf32>
    %17 = vector.broadcast %16 : vector<1x20xf32> to vector<288x20xf32>
    %18 = arith.addf %15, %17 : vector<288x20xf32>
    %cst_6 = arith.constant 0.000000e+00 : f32
    %19 = vector.broadcast %cst_6 : f32 to vector<288x20xf32>
    %20 = arith.maximumf %18, %19 : vector<288x20xf32>
    %c0_7 = arith.constant 0 : index
    %c0_8 = arith.constant 0 : index
    %21 = vector.load %arg4[%c0_7, %c0_8] : memref<288x20xf32, #tpu.memory_space<vmem>>, vector<288x20xf32>
    tpu.vector_store %arg4[%c0_7, %c0_8], %20 {strides = array<i32>} : memref<288x20xf32, #tpu.memory_space<vmem>>, vector<288x20xf32>,
    return
  }
  func.func @transform_0(%arg0: i32) -> (i32, i32, i32) {
    %c0_i32 = arith.constant 0 : i32
    %c0_i32_0 = arith.constant 0 : i32
    %c0_i32_1 = arith.constant 0 : i32
    return %c0_i32, %arg0, %c0_i32_0 : i32, i32, i32
  }
  func.func @transform_1(%arg0: i32) -> (i32, i32) {
    %c0_i32 = arith.constant 0 : i32
    %c0_i32_0 = arith.constant 0 : i32
    %c0_i32_1 = arith.constant 0 : i32
    return %c0_i32, %c0_i32_0 : i32, i32
  }
  func.func @transform_2(%arg0: i32) -> (i32, i32) {
    %c0_i32 = arith.constant 0 : i32
    %c0_i32_0 = arith.constant 0 : i32
    %c0_i32_1 = arith.constant 0 : i32
    return %c0_i32, %c0_i32_0 : i32, i32
  }
  func.func @transform_3(%arg0: i32) -> (i32, i32) {
    %c0_i32 = arith.constant 0 : i32
    %c0_i32_0 = arith.constant 0 : i32
    return %arg0, %c0_i32 : i32, i32
  }
}

module attributes {stable_mosaic.version = 11 : i64} {
  func.func @conv_relu_pool_kernel(%arg0: i32, %arg1: memref<4x32x500xf32, #tpu.memory_space<vmem>>, %arg2: memref<500x40xf32, #tpu.memory_space<vmem>>, %arg3: memref<1x40xf32, #tpu.memory_space<vmem>>, %arg4: memref<32x40xf32, #tpu.memory_space<vmem>>) attributes {dimension_semantics = [#tpu.dimension_semantics<parallel>], iteration_bounds = array<i64: 1>, scalar_prefetch = 0 : i64, scratch_operands = 0 : i64, tpu.core_type = #tpu.core_type<tc>, window_params = [{transform_indices = @transform_0, window_bounds = array<i64: 4, 32, 500>}, {pipeline_mode = #tpu.pipeline_mode<synchronous>, transform_indices = @transform_1, window_bounds = array<i64: 500, 40>}, {pipeline_mode = #tpu.pipeline_mode<synchronous>, transform_indices = @transform_2, window_bounds = array<i64: 1, 40>}, {transform_indices = @transform_3, window_bounds = array<i64: 32, 40>}]} {
    %c0 = arith.constant 0 : index
    %c0_0 = arith.constant 0 : index
    %c0_1 = arith.constant 0 : index
    %0 = vector.load %arg1[%c0, %c0_0, %c0_1] : memref<4x32x500xf32, #tpu.memory_space<vmem>>, vector<4x32x500xf32>
    %1 = vector.shape_cast %0 : vector<4x32x500xf32> to vector<128x500xf32>
    %c0_2 = arith.constant 0 : index
    %c0_3 = arith.constant 0 : index
    %2 = vector.load %arg2[%c0_2, %c0_3] : memref<500x40xf32, #tpu.memory_space<vmem>>, vector<500x40xf32>
    %cst = arith.constant dense<0.000000e+00> : vector<128x40xf32>
    %3 = tpu.matmul %1, %2, %cst {dimension_numbers = #tpu.dot_dimension_numbers<[1], [0], [0], [1], [0, 0, 1, 1], [], []>} : vector<128x500xf32>, vector<500x40xf32>, vector<128x40xf32> -> vector<128x40xf32>
    %4 = vector.shape_cast %3 : vector<128x40xf32> to vector<4x32x40xf32>
    %5 = vector.extract_strided_slice %4 {offsets = [0, 0, 0], sizes = [1, 32, 40], strides = [1, 1, 1]} : vector<4x32x40xf32> to vector<1x32x40xf32>
    %6 = vector.shape_cast %5 : vector<1x32x40xf32> to vector<32x40xf32>
    %7 = vector.extract_strided_slice %4 {offsets = [1, 0, 0], sizes = [1, 32, 40], strides = [1, 1, 1]} : vector<4x32x40xf32> to vector<1x32x40xf32>
    %8 = vector.shape_cast %7 : vector<1x32x40xf32> to vector<32x40xf32>
    %9 = arith.maximumf %6, %8 : vector<32x40xf32>
    %10 = vector.extract_strided_slice %4 {offsets = [2, 0, 0], sizes = [1, 32, 40], strides = [1, 1, 1]} : vector<4x32x40xf32> to vector<1x32x40xf32>
    %11 = vector.shape_cast %10 : vector<1x32x40xf32> to vector<32x40xf32>
    %12 = vector.extract_strided_slice %4 {offsets = [3, 0, 0], sizes = [1, 32, 40], strides = [1, 1, 1]} : vector<4x32x40xf32> to vector<1x32x40xf32>
    %13 = vector.shape_cast %12 : vector<1x32x40xf32> to vector<32x40xf32>
    %14 = arith.maximumf %11, %13 : vector<32x40xf32>
    %15 = arith.maximumf %9, %14 : vector<32x40xf32>
    %c0_4 = arith.constant 0 : index
    %c0_5 = arith.constant 0 : index
    %16 = vector.load %arg3[%c0_4, %c0_5] : memref<1x40xf32, #tpu.memory_space<vmem>>, vector<1x40xf32>
    %17 = vector.broadcast %16 : vector<1x40xf32> to vector<32x40xf32>
    %18 = arith.addf %15, %17 : vector<32x40xf32>
    %cst_6 = arith.constant 0.000000e+00 : f32
    %19 = vector.broadcast %cst_6 : f32 to vector<32x40xf32>
    %20 = arith.maximumf %18, %19 : vector<32x40xf32>
    %c0_7 = arith.constant 0 : index
    %c0_8 = arith.constant 0 : index
    %21 = vector.load %arg4[%c0_7, %c0_8] : memref<32x40xf32, #tpu.memory_space<vmem>>, vector<32x40xf32>
    tpu.vector_store %arg4[%c0_7, %c0_8], %20 {strides = array<i32>} : memref<32x40xf32, #tpu.memory_space<vmem>>, vector<32x40xf32>,
    return
  }
  func.func @transform_0(%arg0: i32) -> (i32, i32, i32) {
    %c0_i32 = arith.constant 0 : i32
    %c0_i32_0 = arith.constant 0 : i32
    %c0_i32_1 = arith.constant 0 : i32
    return %c0_i32, %arg0, %c0_i32_0 : i32, i32, i32
  }
  func.func @transform_1(%arg0: i32) -> (i32, i32) {
    %c0_i32 = arith.constant 0 : i32
    %c0_i32_0 = arith.constant 0 : i32
    %c0_i32_1 = arith.constant 0 : i32
    return %c0_i32, %c0_i32_0 : i32, i32
  }
  func.func @transform_2(%arg0: i32) -> (i32, i32) {
    %c0_i32 = arith.constant 0 : i32
    %c0_i32_0 = arith.constant 0 : i32
    %c0_i32_1 = arith.constant 0 : i32
    return %c0_i32, %c0_i32_0 : i32, i32
  }
  func.func @transform_3(%arg0: i32) -> (i32, i32) {
    %c0_i32 = arith.constant 0 : i32
    %c0_i32_0 = arith.constant 0 : i32
    return %arg0, %c0_i32 : i32, i32
  }
}

module attributes {stable_mosaic.version = 11 : i64} {
  func.func @fc_head_kernel(%arg0: i32, %arg1: memref<2x640xf32, #tpu.memory_space<vmem>>, %arg2: memref<640x120xf32, #tpu.memory_space<vmem>>, %arg3: memref<1x120xf32, #tpu.memory_space<vmem>>, %arg4: memref<120x10xf32, #tpu.memory_space<vmem>>, %arg5: memref<1x10xf32, #tpu.memory_space<vmem>>, %arg6: memref<2x10xf32, #tpu.memory_space<vmem>>) attributes {dimension_semantics = [#tpu.dimension_semantics<parallel>], iteration_bounds = array<i64: 1>, scalar_prefetch = 0 : i64, scratch_operands = 0 : i64, tpu.core_type = #tpu.core_type<tc>, window_params = [{transform_indices = @transform_0, window_bounds = array<i64: 2, 640>}, {pipeline_mode = #tpu.pipeline_mode<synchronous>, transform_indices = @transform_1, window_bounds = array<i64: 640, 120>}, {pipeline_mode = #tpu.pipeline_mode<synchronous>, transform_indices = @transform_2, window_bounds = array<i64: 1, 120>}, {pipeline_mode = #tpu.pipeline_mode<synchronous>, transform_indices = @transform_3, window_bounds = array<i64: 120, 10>}, {pipeline_mode = #tpu.pipeline_mode<synchronous>, transform_indices = @transform_4, window_bounds = array<i64: 1, 10>}, {transform_indices = @transform_5, window_bounds = array<i64: 2, 10>}]} {
    %c0 = arith.constant 0 : index
    %c0_0 = arith.constant 0 : index
    %0 = vector.load %arg1[%c0, %c0_0] : memref<2x640xf32, #tpu.memory_space<vmem>>, vector<2x640xf32>
    %c0_1 = arith.constant 0 : index
    %c0_2 = arith.constant 0 : index
    %1 = vector.load %arg2[%c0_1, %c0_2] : memref<640x120xf32, #tpu.memory_space<vmem>>, vector<640x120xf32>
    %cst = arith.constant dense<0.000000e+00> : vector<2x120xf32>
    %2 = tpu.matmul %0, %1, %cst {dimension_numbers = #tpu.dot_dimension_numbers<[1], [0], [0], [1], [0, 0, 1, 1], [], []>} : vector<2x640xf32>, vector<640x120xf32>, vector<2x120xf32> -> vector<2x120xf32>
    %c0_3 = arith.constant 0 : index
    %c0_4 = arith.constant 0 : index
    %3 = vector.load %arg3[%c0_3, %c0_4] : memref<1x120xf32, #tpu.memory_space<vmem>>, vector<1x120xf32>
    %4 = vector.broadcast %3 : vector<1x120xf32> to vector<2x120xf32>
    %5 = arith.addf %2, %4 : vector<2x120xf32>
    %cst_5 = arith.constant 0.000000e+00 : f32
    %6 = vector.broadcast %cst_5 : f32 to vector<2x120xf32>
    %7 = arith.maximumf %5, %6 : vector<2x120xf32>
    %c0_6 = arith.constant 0 : index
    %c0_7 = arith.constant 0 : index
    %8 = vector.load %arg4[%c0_6, %c0_7] : memref<120x10xf32, #tpu.memory_space<vmem>>, vector<120x10xf32>
    %cst_8 = arith.constant dense<0.000000e+00> : vector<2x10xf32>
    %9 = tpu.matmul %7, %8, %cst_8 {dimension_numbers = #tpu.dot_dimension_numbers<[1], [0], [0], [1], [0, 0, 1, 1], [], []>} : vector<2x120xf32>, vector<120x10xf32>, vector<2x10xf32> -> vector<2x10xf32>
    %c0_9 = arith.constant 0 : index
    %c0_10 = arith.constant 0 : index
    %10 = vector.load %arg5[%c0_9, %c0_10] : memref<1x10xf32, #tpu.memory_space<vmem>>, vector<1x10xf32>
    %11 = vector.broadcast %10 : vector<1x10xf32> to vector<2x10xf32>
    %12 = arith.addf %9, %11 : vector<2x10xf32>
    %cst_11 = arith.constant 0.000000e+00 : f32
    %13 = vector.broadcast %cst_11 : f32 to vector<2x10xf32>
    %14 = arith.maximumf %12, %13 : vector<2x10xf32>
    %cst_12 = arith.constant dense<0xFF800000> : vector<2xf32>
    %15 = vector.multi_reduction <maximumf>, %14, %cst_12 [1] : vector<2x10xf32> to vector<2xf32>
    %16 = vector.shape_cast %15 : vector<2xf32> to vector<2x1xf32>
    %17 = vector.broadcast %16 : vector<2x1xf32> to vector<2x10xf32>
    %18 = arith.subf %14, %17 : vector<2x10xf32>
    %19 = math.exp %18 : vector<2x10xf32>
    %cst_13 = arith.constant dense<0.000000e+00> : vector<2xf32>
    %20 = vector.multi_reduction <add>, %19, %cst_13 [1] : vector<2x10xf32> to vector<2xf32>
    %21 = vector.shape_cast %20 : vector<2xf32> to vector<2x1xf32>
    %22 = math.log %21 : vector<2x1xf32>
    %23 = arith.addf %22, %16 : vector<2x1xf32>
    %24 = vector.broadcast %23 : vector<2x1xf32> to vector<2x10xf32>
    %25 = arith.subf %14, %24 : vector<2x10xf32>
    %c0_14 = arith.constant 0 : index
    %c0_15 = arith.constant 0 : index
    %26 = vector.load %arg6[%c0_14, %c0_15] : memref<2x10xf32, #tpu.memory_space<vmem>>, vector<2x10xf32>
    tpu.vector_store %arg6[%c0_14, %c0_15], %25 {strides = array<i32>} : memref<2x10xf32, #tpu.memory_space<vmem>>, vector<2x10xf32>,
    return
  }
  func.func @transform_0(%arg0: i32) -> (i32, i32) {
    %c0_i32 = arith.constant 0 : i32
    %c0_i32_0 = arith.constant 0 : i32
    return %arg0, %c0_i32 : i32, i32
  }
  func.func @transform_1(%arg0: i32) -> (i32, i32) {
    %c0_i32 = arith.constant 0 : i32
    %c0_i32_0 = arith.constant 0 : i32
    %c0_i32_1 = arith.constant 0 : i32
    return %c0_i32, %c0_i32_0 : i32, i32
  }
  func.func @transform_2(%arg0: i32) -> (i32, i32) {
    %c0_i32 = arith.constant 0 : i32
    %c0_i32_0 = arith.constant 0 : i32
    %c0_i32_1 = arith.constant 0 : i32
    return %c0_i32, %c0_i32_0 : i32, i32
  }
  func.func @transform_3(%arg0: i32) -> (i32, i32) {
    %c0_i32 = arith.constant 0 : i32
    %c0_i32_0 = arith.constant 0 : i32
    %c0_i32_1 = arith.constant 0 : i32
    return %c0_i32, %c0_i32_0 : i32, i32
  }
  func.func @transform_4(%arg0: i32) -> (i32, i32) {
    %c0_i32 = arith.constant 0 : i32
    %c0_i32_0 = arith.constant 0 : i32
    %c0_i32_1 = arith.constant 0 : i32
    return %c0_i32, %c0_i32_0 : i32, i32
  }
  func.func @transform_5(%arg0: i32) -> (i32, i32) {
    %c0_i32 = arith.constant 0 : i32
    %c0_i32_0 = arith.constant 0 : i32
    return %arg0, %c0_i32 : i32, i32
  }
}

</mosaic_0001>

<bundles_post_ra>
// kernel: convnet_forward.3
= control target key start
LH: loop header
LB: loop body
LE: loop exit
PB: predicated region body
PF: predicated region fallthrough
CT: control target
= control target key end

     0   :  { %vm595_vm0 = vcmask 1040384   ;;  %vm162_vm1 = vcmask 203776   ;;  %vm1571_vm2 = vcmask 162816   ;;  %s3147_s1 = inlined_call_operand.vmem [shape: f32[25,20], index: 1, kind: input, shape index: {}]   ;;  %s3148_s0 = inlined_call_operand.vmem [shape: f32[4,288,25], index: 0, kind: input, shape index: {}]   ;;  %s3149_s2 = inlined_call_operand.vmem [shape: f32[1,20], index: 2, kind: input, shape index: {}]   ;;  %s3150_s3 = inlined_call_operand.vmem [shape: f32[288,20], index: 3, kind: output, shape index: {}]  }
   0x1   :  { %v161_v0 = vld [vmem:[%s3147_s1 + $0x18] sm:$0x1]  ;;  %v160_v1 = vld [vmem:[%s3147_s1 + $0x10] sm:$0xff]  ;;  %v159_v2 = vld [vmem:[%s3147_s1 + $0x8] sm:$0xff] }
   0x2   :  { %1906 = vmatprep.subr.msk.mxu0 %vm595_vm0, %v161_v0  ;;  %2130 = vmatprep.subr.msk.mxu1 %vm595_vm0, %v161_v0  ;;  %v158_v3 = vld [vmem:[%s3147_s1] sm:$0xff]  ;;  %v15_v6 = vld [vmem:[%s3148_s0 + $0x8] sm:$0xff]  ;;  %v16_v8 = vld [vmem:[%s3148_s0 + $0x10] sm:$0xff] }
   0x3   :  { %1907 = vmatpush3.msk.msra.mxu0 %vm595_vm0, %v161_v0  ;;  %2134 = vmatpush3.msk.msra.mxu1 %vm595_vm0, %v161_v0  ;;  %v14_v4 = vld [vmem:[%s3148_s0] sm:$0xff]  ;;  %v87_v7 = vld [vmem:[%s3148_s0 + $0x248] sm:$0xff]  ;;  %v88_v9 = vld [vmem:[%s3148_s0 + $0x250] sm:$0xff] }
   0x4   :  { %1908 = vmatprep.subr.mxu0 %v160_v1  ;;  %2131 = vmatprep.subr.mxu1 %v160_v1  ;;  %v86_v5 = vld [vmem:[%s3148_s0 + $0x240] sm:$0xff]  ;;  %v17_v10 = vld [vmem:[%s3148_s0 + $0x18] sm:$0xff]  ;;  %v19_v14 = vld [vmem:[%s3148_s0 + $0x28] sm:$0xff] }
   0x5   :  { %1909 = vmatpush3.msra.mxu0 %v160_v1  ;;  %2135 = vmatpush3.msra.mxu1 %v160_v1  ;;  %v89_v11 = vld [vmem:[%s3148_s0 + $0x258] sm:$0xff]  ;;  %v18_v12 = vld [vmem:[%s3148_s0 + $0x20] sm:$0xff]  ;;  %v91_v15 = vld [vmem:[%s3148_s0 + $0x268] sm:$0xff] }
   0x6   :  { %1910 = vmatprep.subr.mxu0 %v159_v2  ;;  %2132 = vmatprep.subr.mxu1 %v159_v2  ;;  %v90_v13 = vld [vmem:[%s3148_s0 + $0x260] sm:$0xff]  ;;  %v20_v16 = vld [vmem:[%s3148_s0 + $0x30] sm:$0xff]  ;;  %v21_v18 = vld [vmem:[%s3148_s0 + $0x38] sm:$0xff] }
   0x7   :  { %1911 = vmatpush3.msra.mxu0 %v159_v2  ;;  %2136 = vmatpush3.msra.mxu1 %v159_v2  ;;  %v92_v17 = vld [vmem:[%s3148_s0 + $0x270] sm:$0xff]  ;;  %v93_v19 = vld [vmem:[%s3148_s0 + $0x278] sm:$0xff]  ;;  %v22_v20 = vld [vmem:[%s3148_s0 + $0x40] sm:$0xff] }
   0x8   :  { %1912 = vmatprep.subr.mxu0 %v158_v3  ;;  %2133 = vmatprep.subr.mxu1 %v158_v3  ;;  %v94_v21 = vld [vmem:[%s3148_s0 + $0x280] sm:$0xff]  ;;  %v23_v22 = vld [vmem:[%s3148_s0 + $0x48] sm:$0xff]  ;;  %v24_v24 = vld [vmem:[%s3148_s0 + $0x50] sm:$0xff] }
   0x9   :  { %1913 = vmatpush3.msra.mxu0 %v158_v3  ;;  %2137 = vmatpush3.msra.mxu1 %v158_v3  ;;  %v95_v23 = vld [vmem:[%s3148_s0 + $0x288] sm:$0xff]  ;;  %v96_v25 = vld [vmem:[%s3148_s0 + $0x290] sm:$0xff]  ;;  %v25_v26 = vld [vmem:[%s3148_s0 + $0x58] sm:$0xff] }
   0xa   :  { %1914 = vmatprep.mubr.msk.f32.mxu0 %vm162_vm1, %v14_v4  ;;  %2022 = vmatprep.mubr.msk.f32.mxu1 %vm162_vm1, %v86_v5  ;;  %v97_v27 = vld [vmem:[%s3148_s0 + $0x298] sm:$0xff]  ;;  %v26_v28 = vld [vmem:[%s3148_s0 + $0x60] sm:$0xff]  ;;  %v27_v30 = vld [vmem:[%s3148_s0 + $0x68] sm:$0xff] }
   0xb   :  { %1915 = vmatmul.mubr.msk.f32.vlgmr.msra.gmra.mxu0 %vm162_vm1, %v15_v6  ;;  %2023 = vmatmul.mubr.msk.f32.vlgmr.msra.gmra.mxu1 %vm162_vm1, %v87_v7  ;;  %v98_v29 = vld [vmem:[%s3148_s0 + $0x2a0] sm:$0xff]  ;;  %v99_v31 = vld [vmem:[%s3148_s0 + $0x2a8] sm:$0xff]  ;;  %v28_v32 = vld [vmem:[%s3148_s0 + $0x70] sm:$0xff] }
   0xc   :  { %1917 = vmatprep.mubr.msk.f32.mxu0 %vm162_vm1, %v16_v8  ;;  %2025 = vmatprep.mubr.msk.f32.mxu1 %vm162_vm1, %v88_v9  ;;  %v100_v33 = vld [vmem:[%s3148_s0 + $0x2b0] sm:$0xff]  ;;  %v29_v34 = vld [vmem:[%s3148_s0 + $0x78] sm:$0xff]  ;;  %v30_v36 = vld [vmem:[%s3148_s0 + $0x80] sm:$0xff] }
   0xd   :  { %v101_v35 = vld [vmem:[%s3148_s0 + $0x2b8] sm:$0xff]  ;;  %v102_v37 = vld [vmem:[%s3148_s0 + $0x2c0] sm:$0xff]  ;;  %v31_v38 = vld [vmem:[%s3148_s0 + $0x88] sm:$0xff] }
   0xe   :  { %v103_v39 = vld [vmem:[%s3148_s0 + $0x2c8] sm:$0xff]  ;;  %v32_v40 = vld [vmem:[%s3148_s0 + $0x90] sm:$0xff]  ;;  %v33_v42 = vld [vmem:[%s3148_s0 + $0x98] sm:$0xff] }
   0xf   :  { %1918 = vmatmul.mubr.msk.f32.gmra.mxu0 %vm162_vm1, %v17_v10  ;;  %2026 = vmatmul.mubr.msk.f32.gmra.mxu1 %vm162_vm1, %v89_v11  ;;  %v104_v41 = vld [vmem:[%s3148_s0 + $0x2d0] sm:$0xff]  ;;  %v105_v43 = vld [vmem:[%s3148_s0 + $0x2d8] sm:$0xff]  ;;  %v34_v44 = vld [vmem:[%s3148_s0 + $0xa0] sm:$0xff] }
  0x10   :  { %1920 = vmatprep.mubr.msk.f32.mxu0 %vm162_vm1, %v18_v12  ;;  %2028 = vmatprep.mubr.msk.f32.mxu1 %vm162_vm1, %v90_v13  ;;  %v106_v45 = vld [vmem:[%s3148_s0 + $0x2e0] sm:$0xff]  ;;  %v35_v46 = vld [vmem:[%s3148_s0 + $0xa8] sm:$0xff]  ;;  %v36_v48 = vld [vmem:[%s3148_s0 + $0xb0] sm:$0xff] }
  0x11   :  { %v107_v47 = vld [vmem:[%s3148_s0 + $0x2e8] sm:$0xff]  ;;  %v108_v49 = vld [vmem:[%s3148_s0 + $0x2f0] sm:$0xff]  ;;  %v37_v50 = vld [vmem:[%s3148_s0 + $0xb8] sm:$0xff] }
  0x12   :  { %v109_v51 = vld [vmem:[%s3148_s0 + $0x2f8] sm:$0xff]  ;;  %v38_v52 = vld [vmem:[%s3148_s0 + $0xc0] sm:$0xff]  ;;  %v39_v54 = vld [vmem:[%s3148_s0 + $0xc8] sm:$0xff] }
  0x13   :  { %1921 = vmatmul.mubr.msk.f32.gmra.mxu0 %vm162_vm1, %v19_v14  ;;  %2029 = vmatmul.mubr.msk.f32.gmra.mxu1 %vm162_vm1, %v91_v15  ;;  %v110_v53 = vld [vmem:[%s3148_s0 + $0x300] sm:$0xff]  ;;  %v111_v55 = vld [vmem:[%s3148_s0 + $0x308] sm:$0xff]  ;;  %v40_v56 = vld [vmem:[%s3148_s0 + $0xd0] sm:$0xff] }
  0x14   :  { %1923 = vmatprep.mubr.msk.f32.mxu0 %vm162_vm1, %v20_v16  ;;  %2031 = vmatprep.mubr.msk.f32.mxu1 %vm162_vm1, %v92_v17  ;;  %v112_v57 = vld [vmem:[%s3148_s0 + $0x310] sm:$0xff]  ;;  %v41_v58 = vld [vmem:[%s3148_s0 + $0xd8] sm:$0xff]  ;;  %v42_v60 = vld [vmem:[%s3148_s0 + $0xe0] sm:$0xff] }
  0x15   :  { %v113_v59 = vld [vmem:[%s3148_s0 + $0x318] sm:$0xff]  ;;  %v114_v61 = vld [vmem:[%s3148_s0 + $0x320] sm:$0xff]  ;;  %v43_v62 = vld [vmem:[%s3148_s0 + $0xe8] sm:$0xff] }
  0x16   :  { %v115_v63 = vld [vmem:[%s3148_s0 + $0x328] sm:$0xff]  ;;  %v44_v0 = vld [vmem:[%s3148_s0 + $0xf0] sm:$0xff]  ;;  %v45_v2 = vld [vmem:[%s3148_s0 + $0xf8] sm:$0xff] }
  0x17   :  { %1924 = vmatmul.mubr.msk.f32.gmra.mxu0 %vm162_vm1, %v21_v18  ;;  %2032 = vmatmul.mubr.msk.f32.gmra.mxu1 %vm162_vm1, %v93_v19  ;;  %v116_v1 = vld [vmem:[%s3148_s0 + $0x330] sm:$0xff]  ;;  %v117_v3 = vld [vmem:[%s3148_s0 + $0x338] sm:$0xff]  ;;  %v46_v4 = vld [vmem:[%s3148_s0 + $0x100] sm:$0xff] }
  0x18   :  { %1926 = vmatprep.mubr.msk.f32.mxu0 %vm162_vm1, %v22_v20  ;;  %2034 = vmatprep.mubr.msk.f32.mxu1 %vm162_vm1, %v94_v21  ;;  %v118_v5 = vld [vmem:[%s3148_s0 + $0x340] sm:$0xff]  ;;  %v47_v6 = vld [vmem:[%s3148_s0 + $0x108] sm:$0xff]  ;;  %v48_v8 = vld [vmem:[%s3148_s0 + $0x110] sm:$0xff] }
  0x19   :  { %v119_v7 = vld [vmem:[%s3148_s0 + $0x348] sm:$0xff]  ;;  %v120_v9 = vld [vmem:[%s3148_s0 + $0x350] sm:$0xff]  ;;  %v49_v10 = vld [vmem:[%s3148_s0 + $0x118] sm:$0xff] }
  0x1a   :  { %v121_v11 = vld [vmem:[%s3148_s0 + $0x358] sm:$0xff]  ;;  %v50_v12 = vld [vmem:[%s3148_s0 + $0x120] sm:$0xff]  ;;  %v51_v14 = vld [vmem:[%s3148_s0 + $0x128] sm:$0xff] }
  0x1b   :  { %1927 = vmatmul.mubr.msk.f32.gmra.mxu0 %vm162_vm1, %v23_v22  ;;  %2035 = vmatmul.mubr.msk.f32.gmra.mxu1 %vm162_vm1, %v95_v23  ;;  %v122_v13 = vld [vmem:[%s3148_s0 + $0x360] sm:$0xff]  ;;  %v123_v15 = vld [vmem:[%s3148_s0 + $0x368] sm:$0xff]  ;;  %v52_v16 = vld [vmem:[%s3148_s0 + $0x130] sm:$0xff] }
  0x1c   :  { %1929 = vmatprep.mubr.msk.f32.mxu0 %vm162_vm1, %v24_v24  ;;  %2037 = vmatprep.mubr.msk.f32.mxu1 %vm162_vm1, %v96_v25  ;;  %v124_v17 = vld [vmem:[%s3148_s0 + $0x370] sm:$0xff]  ;;  %v53_v18 = vld [vmem:[%s3148_s0 + $0x138] sm:$0xff]  ;;  %v54_v20 = vld [vmem:[%s3148_s0 + $0x140] sm:$0xff] }
  0x1d   :  { %v125_v19 = vld [vmem:[%s3148_s0 + $0x378] sm:$0xff]  ;;  %v126_v21 = vld [vmem:[%s3148_s0 + $0x380] sm:$0xff]  ;;  %v55_v22 = vld [vmem:[%s3148_s0 + $0x148] sm:$0xff] }
  0x1e   :  { %v127_v23 = vld [vmem:[%s3148_s0 + $0x388] sm:$0xff]  ;;  %v56_v24 = vld [vmem:[%s3148_s0 + $0x150] sm:$0xff] }
  0x1f   :  { %1930 = vmatmul.mubr.msk.f32.gmra.mxu0 %vm162_vm1, %v25_v26  ;;  %2038 = vmatmul.mubr.msk.f32.gmra.mxu1 %vm162_vm1, %v97_v27  ;;  %v128_v25 = vld [vmem:[%s3148_s0 + $0x390] sm:$0xff]  ;;  %v57_v26 = vld [vmem:[%s3148_s0 + $0x158] sm:$0xff] }
  0x20   :  { %1932 = vmatprep.mubr.msk.f32.mxu0 %vm162_vm1, %v26_v28  ;;  %2040 = vmatprep.mubr.msk.f32.mxu1 %vm162_vm1, %v98_v29  ;;  %v129_v27 = vld [vmem:[%s3148_s0 + $0x398] sm:$0xff]  ;;  %v58_v28 = vld [vmem:[%s3148_s0 + $0x160] sm:$0xff] }
  0x21   :  { %v130_v29 = vld [vmem:[%s3148_s0 + $0x3a0] sm:$0xff] }
  0x23   :  { %1933 = vmatmul.mubr.msk.f32.gmra.mxu0 %vm162_vm1, %v27_v30  ;;  %2041 = vmatmul.mubr.msk.f32.gmra.mxu1 %vm162_vm1, %v99_v31  ;;  %v59_v30 = vld [vmem:[%s3148_s0 + $0x168] sm:$0xff] }
  0x24   :  { %1935 = vmatprep.mubr.msk.f32.mxu0 %vm162_vm1, %v28_v32  ;;  %2043 = vmatprep.mubr.msk.f32.mxu1 %vm162_vm1, %v100_v33  ;;  %v131_v31 = vld [vmem:[%s3148_s0 + $0x3a8] sm:$0xff]  ;;  %v60_v32 = vld [vmem:[%s3148_s0 + $0x170] sm:$0xff] }
  0x25   :  { %v132_v33 = vld [vmem:[%s3148_s0 + $0x3b0] sm:$0xff] }
  0x27   :  { %1936 = vmatmul.mubr.msk.f32.gmra.mxu0 %vm162_vm1, %v29_v34  ;;  %2044 = vmatmul.mubr.msk.f32.gmra.mxu1 %vm162_vm1, %v101_v35  ;;  %v61_v34 = vld [vmem:[%s3148_s0 + $0x178] sm:$0xff] }
  0x28   :  { %1938 = vmatprep.mubr.msk.f32.mxu0 %vm162_vm1, %v30_v36  ;;  %2046 = vmatprep.mubr.msk.f32.mxu1 %vm162_vm1, %v102_v37  ;;  %v133_v35 = vld [vmem:[%s3148_s0 + $0x3b8] sm:$0xff]  ;;  %v62_v36 = vld [vmem:[%s3148_s0 + $0x180] sm:$0xff] }
  0x29   :  { %v134_v37 = vld [vmem:[%s3148_s0 + $0x3c0] sm:$0xff] }
  0x2b   :  { %1939 = vmatmul.mubr.msk.f32.gmra.mxu0 %vm162_vm1, %v31_v38  ;;  %2047 = vmatmul.mubr.msk.f32.gmra.mxu1 %vm162_vm1, %v103_v39  ;;  %v63_v38 = vld [vmem:[%s3148_s0 + $0x188] sm:$0xff] }
  0x2c   :  { %1941 = vmatprep.mubr.msk.f32.mxu0 %vm162_vm1, %v32_v40  ;;  %2049 = vmatprep.mubr.msk.f32.mxu1 %vm162_vm1, %v104_v41  ;;  %v135_v39 = vld [vmem:[%s3148_s0 + $0x3c8] sm:$0xff]  ;;  %v64_v40 = vld [vmem:[%s3148_s0 + $0x190] sm:$0xff] }
  0x2d   :  { %v136_v41 = vld [vmem:[%s3148_s0 + $0x3d0] sm:$0xff] }
  0x2f   :  { %1942 = vmatmul.mubr.msk.f32.gmra.mxu0 %vm162_vm1, %v33_v42  ;;  %2050 = vmatmul.mubr.msk.f32.gmra.mxu1 %vm162_vm1, %v105_v43  ;;  %v65_v42 = vld [vmem:[%s3148_s0 + $0x198] sm:$0xff] }
  0x30   :  { %1944 = vmatprep.mubr.msk.f32.mxu0 %vm162_vm1, %v34_v44  ;;  %2052 = vmatprep.mubr.msk.f32.mxu1 %vm162_vm1, %v106_v45  ;;  %v137_v43 = vld [vmem:[%s3148_s0 + $0x3d8] sm:$0xff]  ;;  %v66_v44 = vld [vmem:[%s3148_s0 + $0x1a0] sm:$0xff] }
  0x31   :  { %v138_v45 = vld [vmem:[%s3148_s0 + $0x3e0] sm:$0xff] }
  0x33   :  { %1945 = vmatmul.mubr.msk.f32.gmra.mxu0 %vm162_vm1, %v35_v46  ;;  %2053 = vmatmul.mubr.msk.f32.gmra.mxu1 %vm162_vm1, %v107_v47  ;;  %v67_v46 = vld [vmem:[%s3148_s0 + $0x1a8] sm:$0xff] }
  0x34   :  { %1947 = vmatprep.mubr.msk.f32.mxu0 %vm162_vm1, %v36_v48  ;;  %2055 = vmatprep.mubr.msk.f32.mxu1 %vm162_vm1, %v108_v49  ;;  %v139_v47 = vld [vmem:[%s3148_s0 + $0x3e8] sm:$0xff]  ;;  %v68_v48 = vld [vmem:[%s3148_s0 + $0x1b0] sm:$0xff] }
  0x35   :  { %v140_v49 = vld [vmem:[%s3148_s0 + $0x3f0] sm:$0xff] }
  0x37   :  { %1948 = vmatmul.mubr.msk.f32.gmra.mxu0 %vm162_vm1, %v37_v50  ;;  %2056 = vmatmul.mubr.msk.f32.gmra.mxu1 %vm162_vm1, %v109_v51  ;;  %v69_v50 = vld [vmem:[%s3148_s0 + $0x1b8] sm:$0xff] }
  0x38   :  { %1950 = vmatprep.mubr.msk.f32.mxu0 %vm162_vm1, %v38_v52  ;;  %2058 = vmatprep.mubr.msk.f32.mxu1 %vm162_vm1, %v110_v53  ;;  %v141_v51 = vld [vmem:[%s3148_s0 + $0x3f8] sm:$0xff]  ;;  %v70_v52 = vld [vmem:[%s3148_s0 + $0x1c0] sm:$0xff] }
  0x39   :  { %v142_v53 = vld [vmem:[%s3148_s0 + $0x400] sm:$0xff] }
  0x3b   :  { %1951 = vmatmul.mubr.msk.f32.gmra.mxu0 %vm162_vm1, %v39_v54  ;;  %2059 = vmatmul.mubr.msk.f32.gmra.mxu1 %vm162_vm1, %v111_v55  ;;  %v71_v54 = vld [vmem:[%s3148_s0 + $0x1c8] sm:$0xff] }
  0x3c   :  { %1953 = vmatprep.mubr.msk.f32.mxu0 %vm162_vm1, %v40_v56  ;;  %2061 = vmatprep.mubr.msk.f32.mxu1 %vm162_vm1, %v112_v57  ;;  %v143_v55 = vld [vmem:[%s3148_s0 + $0x408] sm:$0xff]  ;;  %v72_v56 = vld [vmem:[%s3148_s0 + $0x1d0] sm:$0xff] }
  0x3d   :  { %v144_v57 = vld [vmem:[%s3148_s0 + $0x410] sm:$0xff] }
  0x3f   :  { %1954 = vmatmul.mubr.msk.f32.gmra.mxu0 %vm162_vm1, %v41_v58  ;;  %2062 = vmatmul.mubr.msk.f32.gmra.mxu1 %vm162_vm1, %v113_v59  ;;  %v73_v58 = vld [vmem:[%s3148_s0 + $0x1d8] sm:$0xff] }
  0x40   :  { %1956 = vmatprep.mubr.msk.f32.mxu0 %vm162_vm1, %v42_v60  ;;  %2064 = vmatprep.mubr.msk.f32.mxu1 %vm162_vm1, %v114_v61  ;;  %v145_v59 = vld [vmem:[%s3148_s0 + $0x418] sm:$0xff]  ;;  %v74_v60 = vld [vmem:[%s3148_s0 + $0x1e0] sm:$0xff] }
  0x41   :  { %v146_v61 = vld [vmem:[%s3148_s0 + $0x420] sm:$0xff] }
  0x43   :  { %1957 = vmatmul.mubr.msk.f32.gmra.mxu0 %vm162_vm1, %v43_v62  ;;  %2065 = vmatmul.mubr.msk.f32.gmra.mxu1 %vm162_vm1, %v115_v63  ;;  %v75_v62 = vld [vmem:[%s3148_s0 + $0x1e8] sm:$0xff] }
  0x44   :  { %1959 = vmatprep.mubr.msk.f32.mxu0 %vm162_vm1, %v44_v0  ;;  %2067 = vmatprep.mubr.msk.f32.mxu1 %vm162_vm1, %v116_v1  ;;  %v147_v63 = vld [vmem:[%s3148_s0 + $0x428] sm:$0xff]  ;;  %v76_v0 = vld [vmem:[%s3148_s0 + $0x1f0] sm:$0xff] }
  0x45   :  { %v148_v1 = vld [vmem:[%s3148_s0 + $0x430] sm:$0xff] }
  0x47   :  { %1960 = vmatmul.mubr.msk.f32.gmra.mxu0 %vm162_vm1, %v45_v2  ;;  %2068 = vmatmul.mubr.msk.f32.gmra.mxu1 %vm162_vm1, %v117_v3  ;;  %v77_v2 = vld [vmem:[%s3148_s0 + $0x1f8] sm:$0xff] }
  0x48   :  { %1962 = vmatprep.mubr.msk.f32.mxu0 %vm162_vm1, %v46_v4  ;;  %2070 = vmatprep.mubr.msk.f32.mxu1 %vm162_vm1, %v118_v5  ;;  %v149_v3 = vld [vmem:[%s3148_s0 + $0x438] sm:$0xff]  ;;  %v78_v4 = vld [vmem:[%s3148_s0 + $0x200] sm:$0xff] }
  0x49   :  { %v150_v5 = vld [vmem:[%s3148_s0 + $0x440] sm:$0xff] }
  0x4b   :  { %1963 = vmatmul.mubr.msk.f32.gmra.mxu0 %vm162_vm1, %v47_v6  ;;  %2071 = vmatmul.mubr.msk.f32.gmra.mxu1 %vm162_vm1, %v119_v7  ;;  %v79_v6 = vld [vmem:[%s3148_s0 + $0x208] sm:$0xff] }
  0x4c   :  { %1965 = vmatprep.mubr.msk.f32.mxu0 %vm162_vm1, %v48_v8  ;;  %2073 = vmatprep.mubr.msk.f32.mxu1 %vm162_vm1, %v120_v9  ;;  %v151_v7 = vld [vmem:[%s3148_s0 + $0x448] sm:$0xff]  ;;  %v80_v8 = vld [vmem:[%s3148_s0 + $0x210] sm:$0xff] }
  0x4d   :  { %v152_v9 = vld [vmem:[%s3148_s0 + $0x450] sm:$0xff] }
  0x4f   :  { %1966 = vmatmul.mubr.msk.f32.gmra.mxu0 %vm162_vm1, %v49_v10  ;;  %2074 = vmatmul.mubr.msk.f32.gmra.mxu1 %vm162_vm1, %v121_v11  ;;  %v81_v10 = vld [vmem:[%s3148_s0 + $0x218] sm:$0xff] }
  0x50   :  { %1968 = vmatprep.mubr.msk.f32.mxu0 %vm162_vm1, %v50_v12  ;;  %2076 = vmatprep.mubr.msk.f32.mxu1 %vm162_vm1, %v122_v13  ;;  %v153_v11 = vld [vmem:[%s3148_s0 + $0x458] sm:$0xff]  ;;  %v82_v12 = vld [vmem:[%s3148_s0 + $0x220] sm:$0xff] }
  0x51   :  { %v154_v13 = vld [vmem:[%s3148_s0 + $0x460] sm:$0xff] }
  0x53   :  { %1969 = vmatmul.mubr.msk.f32.gmra.mxu0 %vm162_vm1, %v51_v14  ;;  %2077 = vmatmul.mubr.msk.f32.gmra.mxu1 %vm162_vm1, %v123_v15  ;;  %v83_v14 = vld [vmem:[%s3148_s0 + $0x228] sm:$0xff] }
  0x54   :  { %1971 = vmatprep.mubr.msk.f32.mxu0 %vm162_vm1, %v52_v16  ;;  %2079 = vmatprep.mubr.msk.f32.mxu1 %vm162_vm1, %v124_v17  ;;  %v155_v15 = vld [vmem:[%s3148_s0 + $0x468] sm:$0xff]  ;;  %v84_v16 = vld [vmem:[%s3148_s0 + $0x230] sm:$0xff] }
  0x55   :  { %v156_v17 = vld [vmem:[%s3148_s0 + $0x470] sm:$0xff] }
  0x57   :  { %1972 = vmatmul.mubr.msk.f32.gmra.mxu0 %vm162_vm1, %v53_v18  ;;  %2080 = vmatmul.mubr.msk.f32.gmra.mxu1 %vm162_vm1, %v125_v19  ;;  %v85_v18 = vld [vmem:[%s3148_s0 + $0x238] sm:$0xff] }
  0x58   :  { %1974 = vmatprep.mubr.msk.f32.mxu0 %vm162_vm1, %v54_v20  ;;  %2082 = vmatprep.mubr.msk.f32.mxu1 %vm162_vm1, %v126_v21  ;;  %v157_v19 = vld [vmem:[%s3148_s0 + $0x478] sm:$0xff] }
  0x5b   :  { %1975 = vmatmul.mubr.msk.f32.gmra.mxu0 %vm162_vm1, %v55_v22  ;;  %2083 = vmatmul.mubr.msk.f32.gmra.mxu1 %vm162_vm1, %v127_v23 }
  0x5c   :  { %1977 = vmatprep.mubr.msk.f32.mxu0 %vm162_vm1, %v56_v24  ;;  %2085 = vmatprep.mubr.msk.f32.mxu1 %vm162_vm1, %v128_v25 }
  0x5f   :  { %1978 = vmatmul.mubr.msk.f32.gmra.mxu0 %vm162_vm1, %v57_v26  ;;  %2086 = vmatmul.mubr.msk.f32.gmra.mxu1 %vm162_vm1, %v129_v27 }
  0x60   :  { %1980 = vmatprep.mubr.msk.f32.mxu0 %vm162_vm1, %v58_v28  ;;  %2088 = vmatprep.mubr.msk.f32.mxu1 %vm162_vm1, %v130_v29 }
  0x63   :  { %1981 = vmatmul.mubr.msk.f32.gmra.mxu0 %vm162_vm1, %v59_v30  ;;  %2089 = vmatmul.mubr.msk.f32.gmra.mxu1 %vm162_vm1, %v131_v31 }
  0x64   :  { %1983 = vmatprep.mubr.msk.f32.mxu0 %vm162_vm1, %v60_v32  ;;  %2091 = vmatprep.mubr.msk.f32.mxu1 %vm162_vm1, %v132_v33 }
  0x67   :  { %1984 = vmatmul.mubr.msk.f32.gmra.mxu0 %vm162_vm1, %v61_v34  ;;  %2092 = vmatmul.mubr.msk.f32.gmra.mxu1 %vm162_vm1, %v133_v35 }
  0x68   :  { %1986 = vmatprep.mubr.msk.f32.mxu0 %vm162_vm1, %v62_v36  ;;  %2094 = vmatprep.mubr.msk.f32.mxu1 %vm162_vm1, %v134_v37 }
  0x6b   :  { %1987 = vmatmul.mubr.msk.f32.gmra.mxu0 %vm162_vm1, %v63_v38  ;;  %2095 = vmatmul.mubr.msk.f32.gmra.mxu1 %vm162_vm1, %v135_v39 }
  0x6c   :  { %1989 = vmatprep.mubr.msk.f32.mxu0 %vm162_vm1, %v64_v40  ;;  %2097 = vmatprep.mubr.msk.f32.mxu1 %vm162_vm1, %v136_v41 }
  0x6f   :  { %1990 = vmatmul.mubr.msk.f32.gmra.mxu0 %vm162_vm1, %v65_v42  ;;  %2098 = vmatmul.mubr.msk.f32.gmra.mxu1 %vm162_vm1, %v137_v43 }
  0x70   :  { %1992 = vmatprep.mubr.msk.f32.mxu0 %vm162_vm1, %v66_v44  ;;  %2100 = vmatprep.mubr.msk.f32.mxu1 %vm162_vm1, %v138_v45 }
  0x73   :  { %1993 = vmatmul.mubr.msk.f32.gmra.mxu0 %vm162_vm1, %v67_v46  ;;  %2101 = vmatmul.mubr.msk.f32.gmra.mxu1 %vm162_vm1, %v139_v47 }
  0x74   :  { %1995 = vmatprep.mubr.msk.f32.mxu0 %vm162_vm1, %v68_v48  ;;  %2103 = vmatprep.mubr.msk.f32.mxu1 %vm162_vm1, %v140_v49 }
  0x77   :  { %1996 = vmatmul.mubr.msk.f32.gmra.mxu0 %vm162_vm1, %v69_v50  ;;  %2104 = vmatmul.mubr.msk.f32.gmra.mxu1 %vm162_vm1, %v141_v51 }
  0x78   :  { %1998 = vmatprep.mubr.msk.f32.mxu0 %vm162_vm1, %v70_v52  ;;  %2106 = vmatprep.mubr.msk.f32.mxu1 %vm162_vm1, %v142_v53 }
  0x7b   :  { %1999 = vmatmul.mubr.msk.f32.gmra.mxu0 %vm162_vm1, %v71_v54  ;;  %2107 = vmatmul.mubr.msk.f32.gmra.mxu1 %vm162_vm1, %v143_v55 }
  0x7c   :  { %2001 = vmatprep.mubr.msk.f32.mxu0 %vm162_vm1, %v72_v56  ;;  %2109 = vmatprep.mubr.msk.f32.mxu1 %vm162_vm1, %v144_v57 }
  0x7f   :  { %2002 = vmatmul.mubr.msk.f32.gmra.mxu0 %vm162_vm1, %v73_v58  ;;  %2110 = vmatmul.mubr.msk.f32.gmra.mxu1 %vm162_vm1, %v145_v59 }
  0x80   :  { %2004 = vmatprep.mubr.msk.f32.mxu0 %vm162_vm1, %v74_v60  ;;  %2112 = vmatprep.mubr.msk.f32.mxu1 %vm162_vm1, %v146_v61 }
  0x83   :  { %2005 = vmatmul.mubr.msk.f32.gmra.mxu0 %vm162_vm1, %v75_v62  ;;  %2113 = vmatmul.mubr.msk.f32.gmra.mxu1 %vm162_vm1, %v147_v63 }
  0x84   :  { %2007 = vmatprep.mubr.msk.f32.mxu0 %vm162_vm1, %v76_v0  ;;  %2115 = vmatprep.mubr.msk.f32.mxu1 %vm162_vm1, %v148_v1 }
  0x87   :  { %2008 = vmatmul.mubr.msk.f32.gmra.mxu0 %vm162_vm1, %v77_v2  ;;  %2116 = vmatmul.mubr.msk.f32.gmra.mxu1 %vm162_vm1, %v149_v3 }
  0x88   :  { %2010 = vmatprep.mubr.msk.f32.mxu0 %vm162_vm1, %v78_v4  ;;  %2118 = vmatprep.mubr.msk.f32.mxu1 %vm162_vm1, %v150_v5 }
  0x8b   :  { %2011 = vmatmul.mubr.msk.f32.gmra.mxu0 %vm162_vm1, %v79_v6  ;;  %2119 = vmatmul.mubr.msk.f32.gmra.mxu1 %vm162_vm1, %v151_v7 }
  0x8c   :  { %2013 = vmatprep.mubr.msk.f32.mxu0 %vm162_vm1, %v80_v8  ;;  %2121 = vmatprep.mubr.msk.f32.mxu1 %vm162_vm1, %v152_v9 }
  0x8f   :  { %2014 = vmatmul.mubr.msk.f32.gmra.mxu0 %vm162_vm1, %v81_v10  ;;  %2122 = vmatmul.mubr.msk.f32.gmra.mxu1 %vm162_vm1, %v153_v11 }
  0x90   :  { %2016 = vmatprep.mubr.msk.f32.mxu0 %vm162_vm1, %v82_v12  ;;  %2124 = vmatprep.mubr.msk.f32.mxu1 %vm162_vm1, %v154_v13 }
  0x93   :  { %2017 = vmatmul.mubr.msk.f32.gmra.mxu0 %vm162_vm1, %v83_v14  ;;  %2125 = vmatmul.mubr.msk.f32.gmra.mxu1 %vm162_vm1, %v155_v15 }
  0x94   :  { %2019 = vmatprep.mubr.msk.f32.mxu0 %vm162_vm1, %v84_v16  ;;  %2127 = vmatprep.mubr.msk.f32.mxu1 %vm162_vm1, %v156_v17 }
  0x97   :  { %2020 = vmatmul.mubr.msk.f32.gmra.mxu0 %vm162_vm1, %v85_v18  ;;  %2128 = vmatmul.mubr.msk.f32.gmra.mxu1 %vm162_vm1, %v157_v19 }
  0xcb   :  { %v2746_v20 = vpop.f32.mrf.mxu0  ;;  %v2748_v21 = vpop.f32.mrf.mxu1 }
  0xcd   :  { %v2750_v22 = vpop.f32.mrf.mxu0  ;;  %v2752_v23 = vpop.f32.mrf.mxu1 }
  0xcf   :  { %v2754_v24 = vpop.f32.mrf.mxu0  ;;  %v2756_v25 = vpop.f32.mrf.mxu1 }
  0xd1   :  { %v2758_v26 = vpop.f32.mrf.mxu0  ;;  %v2760_v27 = vpop.f32.mrf.mxu1 }
  0xd3   :  { %v2762_v28 = vpop.f32.mrf.mxu0  ;;  %v2764_v29 = vpop.f32.mrf.mxu1 }
  0xd5   :  { %v2766_v30 = vpop.f32.mrf.mxu0  ;;  %v2768_v31 = vpop.f32.mrf.mxu1 }
  0xd7   :  { %v2770_v32 = vpop.f32.mrf.mxu0  ;;  %v2772_v33 = vpop.f32.mrf.mxu1 }
  0xd9   :  { %v2774_v34 = vpop.f32.mrf.mxu0  ;;  %v2776_v35 = vpop.f32.mrf.mxu1 }
  0xdb   :  { %v2778_v36 = vpop.f32.mrf.mxu0  ;;  %v2780_v37 = vpop.f32.mrf.mxu1 }
  0xdd   :  { %v2782_v38 = vpop.f32.mrf.mxu0  ;;  %v2784_v39 = vpop.f32.mrf.mxu1 }
  0xdf   :  { %v2786_v40 = vpop.f32.mrf.mxu0  ;;  %v2788_v41 = vpop.f32.mrf.mxu1 }
  0xe1   :  { %v2790_v42 = vpop.f32.mrf.mxu0  ;;  %v2792_v43 = vpop.f32.mrf.mxu1 }
  0xe3   :  { %v2794_v44 = vpop.f32.mrf.mxu0  ;;  %v2796_v45 = vpop.f32.mrf.mxu1 }
  0xe5   :  { %v2798_v46 = vpop.f32.mrf.mxu0  ;;  %v2800_v47 = vpop.f32.mrf.mxu1 }
  0xe7   :  { %v2802_v48 = vpop.f32.mrf.mxu0  ;;  %v2804_v49 = vpop.f32.mrf.mxu1 }
  0xe9   :  { %v2806_v50 = vpop.f32.mrf.mxu0  ;;  %v2808_v51 = vpop.f32.mrf.mxu1 }
  0xeb   :  { %v2810_v52 = vpop.f32.mrf.mxu0  ;;  %v2812_v53 = vpop.f32.mrf.mxu1 }
  0xed   :  { %v2814_v54 = vpop.f32.mrf.mxu0  ;;  %v2816_v55 = vpop.f32.mrf.mxu1 }
  0xef   :  { %v2818_v56 = vpop.f32.mrf.mxu0  ;;  %v2820_v57 = vpop.f32.mrf.mxu1 }
  0xf1   :  { %v2822_v58 = vpop.f32.mrf.mxu0  ;;  %v2824_v59 = vpop.f32.mrf.mxu1 }
  0xf3   :  { %v2826_v60 = vpop.f32.mrf.mxu0  ;;  %v2828_v61 = vpop.f32.mrf.mxu1 }
  0xf5   :  { %v2830_v62 = vpop.f32.mrf.mxu0  ;;  %v2832_v63 = vpop.f32.mrf.mxu1 }
  0xf7   :  { %v2834_v0 = vpop.f32.mrf.mxu0  ;;  %v2836_v1 = vpop.f32.mrf.mxu1 }
  0xf9   :  { %v2838_v2 = vpop.f32.mrf.mxu0  ;;  %v2840_v3 = vpop.f32.mrf.mxu1 }
  0xfb   :  { %v2842_v4 = vpop.f32.mrf.mxu0  ;;  %v2844_v5 = vpop.f32.mrf.mxu1 }
  0xfc   :  { %3151 = vst [vmem:[#allocation2_spill] sm:$0xff] %v2842_v4  ;;  %3152 = vst [vmem:[#allocation3_spill] sm:$0xff] %v2844_v5 }
  0xfd   :  { %v2846_v6 = vpop.f32.mrf.mxu0  ;;  %v2848_v7 = vpop.f32.mrf.mxu1 }
  0xfe   :  { %3153 = vst [vmem:[#allocation4_spill] sm:$0xff] %v2846_v6  ;;  %3154 = vst [vmem:[#allocation5_spill] sm:$0xff] %v2848_v7 }
  0xff   :  { %v2850_v8 = vpop.f32.mrf.mxu0  ;;  %v2852_v9 = vpop.f32.mrf.mxu1 }
 0x100   :  { %3155 = vst [vmem:[#allocation6_spill] sm:$0xff] %v2850_v8  ;;  %3156 = vst [vmem:[#allocation7_spill] sm:$0xff] %v2852_v9 }
 0x101   :  { %v2854_v10 = vpop.f32.mrf.mxu0  ;;  %v2856_v11 = vpop.f32.mrf.mxu1 }
 0x102   :  { %3157 = vst [vmem:[#allocation8_spill] sm:$0xff] %v2854_v10  ;;  %3158 = vst [vmem:[#allocation9_spill] sm:$0xff] %v2856_v11 }
 0x103   :  { %v2858_v12 = vpop.f32.mrf.mxu0  ;;  %v2860_v13 = vpop.f32.mrf.mxu1 }
 0x104   :  { %3159 = vst [vmem:[#allocation10_spill] sm:$0xff] %v2858_v12  ;;  %3160 = vst [vmem:[#allocation11_spill] sm:$0xff] %v2860_v13 }
 0x105   :  { %v2862_v14 = vpop.f32.mrf.mxu0  ;;  %v2864_v15 = vpop.f32.mrf.mxu1 }
 0x106   :  { %3161 = vst [vmem:[#allocation12_spill] sm:$0xff] %v2862_v14  ;;  %3162 = vst [vmem:[#allocation13_spill] sm:$0xff] %v2864_v15 }
 0x107   :  { %v2866_v16 = vpop.f32.mrf.mxu0  ;;  %v2868_v17 = vpop.f32.mrf.mxu1 }
 0x108   :  { %3163 = vst [vmem:[#allocation14_spill] sm:$0xff] %v2866_v16  ;;  %3164 = vst [vmem:[#allocation15_spill] sm:$0xff] %v2868_v17 }
 0x109   :  { %v2870_v18 = vpop.f32.mrf.mxu0  ;;  %v2872_v19 = vpop.f32.mrf.mxu1 }
 0x10a   :  { %3165 = vst [vmem:[#allocation16_spill] sm:$0xff] %v2870_v18  ;;  %3166 = vst [vmem:[#allocation17_spill] sm:$0xff] %v2872_v19 }
 0x10b   :  { %v2874_v9 = vpop.f32.mrf.mxu0  ;;  %v2876_v10 = vpop.f32.mrf.mxu1 }
 0x10c   :  { %3167 = vst [vmem:[#allocation18_spill] sm:$0xff] %v2874_v9  ;;  %3168 = vst [vmem:[#allocation19_spill] sm:$0xff] %v2876_v10 }
 0x10d   :  { %v2878_v11 = vpop.f32.mrf.mxu0  ;;  %v2880_v12 = vpop.f32.mrf.mxu1 }
 0x10e   :  { %3169 = vst [vmem:[#allocation20_spill] sm:$0xff] %v2878_v11  ;;  %3170 = vst [vmem:[#allocation21_spill] sm:$0xff] %v2880_v12  ;;  %v2895_v11 = vld [vmem:[%s3149_s2] ss:$0 sm:$0xff] }
 0x10f   :  { %v2882_v13 = vpop.f32.mrf.mxu0  ;;  %v2884_v14 = vpop.f32.mrf.mxu1 }
 0x110   :  { %3171 = vst [vmem:[#allocation22_spill] sm:$0xff] %v2882_v13  ;;  %3172 = vst [vmem:[#allocation23_spill] sm:$0xff] %v2884_v14 }
 0x111   :  { %v2886_v15 = vpop.f32.mrf.mxu0  ;;  %v2888_v16 = vpop.f32.mrf.mxu1 }
 0x112   :  { %3173 = vst [vmem:[#allocation24_spill] sm:$0xff] %v2886_v15  ;;  %3174 = vst [vmem:[#allocation25_spill] sm:$0xff] %v2888_v16 }
 0x113   :  { %v1970_v17 = vpop.f32.mrf.mxu0  ;;  %v2078_v18 = vpop.f32.mrf.mxu1 }
 0x114   :  { %v1385_v19 = vmax.f32 %v2746_v20, %v1970_v17  ;;  %v1421_v9 = vmax.f32 %v2748_v21, %v2078_v18 }
 0x115   :  { %v845_v12 = vpop.f32.mrf.mxu0  ;;  %v1205_v10 = vpop.f32.mrf.mxu1 }
 0x116   :  { %v1457_v13 = vmax.f32 %v1385_v19, %v1421_v9  ;;  %v1384_v14 = vmax.f32 %v2750_v22, %v845_v12  ;;  %v1420_v15 = vmax.f32 %v2752_v23, %v1205_v10 }
 0x117   :  { %v1973_v8 = vpop.f32.mrf.mxu0  ;;  %v2081_v16 = vpop.f32.mrf.mxu1 }
 0x118   :  { %v1500_v7 = vadd.f32 %v2895_v11, %v1457_v13  ;;  %v1456_v6 = vmax.f32 %v1384_v14, %v1420_v15  ;;  %v1387_v20 = vmax.f32 %v2754_v24, %v1973_v8  ;;  %v1423_v21 = vmax.f32 %v2756_v25, %v2081_v16 }
 0x119   :  { %v855_v17 = vpop.f32.mrf.mxu0  ;;  %v1215_v18 = vpop.f32.mrf.mxu1 }
 0x11a   :  { %v1536_v5 = vmax.f32 %v1500_v7, 0.0  ;;  %v1499_v4 = vadd.f32 %v2895_v11, %v1456_v6  ;;  %v1459_v9 = vmax.f32 %v1387_v20, %v1423_v21  ;;  %v1386_v22 = vmax.f32 %v2758_v26, %v855_v17 }
 0x11b   :  { %v1422_v23 = vmax.f32 %v2760_v27, %v1215_v18  ;;  %v1976_v10 = vpop.f32.mrf.mxu0  ;;  %v2084_v12 = vpop.f32.mrf.mxu1 }
 0x11c   :  { %1573 = vst.msk [vmem:[%s3150_s3 + $0x8] sm:$0xff] %vm1571_vm2, %v1536_v5  ;;  %v1535_v24 = vmax.f32 %v1499_v4, 0.0  ;;  %v1502_v25 = vadd.f32 %v2895_v11, %v1459_v9  ;;  %v1389_v8 = vmax.f32 %v2762_v28, %v1976_v10  ;;  %v1425_v7 = vmax.f32 %v2764_v29, %v2084_v12 }
 0x11d   :  { %v1458_v6 = vmax.f32 %v1386_v22, %v1422_v23  ;;  %v865_v13 = vpop.f32.mrf.mxu0  ;;  %v1225_v14 = vpop.f32.mrf.mxu1 }
 0x11e   :  { %1572 = vst.msk [vmem:[%s3150_s3] sm:$0xff] %vm1571_vm2, %v1535_v24  ;;  %v1538_v26 = vmax.f32 %v1502_v25, 0.0  ;;  %v1461_v27 = vmax.f32 %v1389_v8, %v1425_v7  ;;  %v1388_v15 = vmax.f32 %v2766_v30, %v865_v13  ;;  %v1424_v4 = vmax.f32 %v2768_v31, %v1225_v14 }
 0x11f   :  { %v1501_v5 = vadd.f32 %v2895_v11, %v1458_v6  ;;  %v1979_v16 = vpop.f32.mrf.mxu0  ;;  %v2087_v28 = vpop.f32.mrf.mxu1 }
 0x120   :  { %1575 = vst.msk [vmem:[%s3150_s3 + $0x18] sm:$0xff] %vm1571_vm2, %v1538_v26  ;;  %v1504_v29 = vadd.f32 %v2895_v11, %v1461_v27  ;;  %v1460_v19 = vmax.f32 %v1388_v15, %v1424_v4  ;;  %v1391_v20 = vmax.f32 %v2770_v32, %v1979_v16  ;;  %v1427_v21 = vmax.f32 %v2772_v33, %v2087_v28 }
 0x121   :  { %v1537_v17 = vmax.f32 %v1501_v5, 0.0  ;;  %v875_v30 = vpop.f32.mrf.mxu0  ;;  %v1235_v18 = vpop.f32.mrf.mxu1 }
 0x122   :  { %v1540_v31 = vmax.f32 %v1504_v29, 0.0  ;;  %v1503_v9 = vadd.f32 %v2895_v11, %v1460_v19  ;;  %v1463_v22 = vmax.f32 %v1391_v20, %v1427_v21  ;;  %v1390_v23 = vmax.f32 %v2774_v34, %v875_v30 }
 0x123   :  { %1574 = vst.msk [vmem:[%s3150_s3 + $0x10] sm:$0xff] %vm1571_vm2, %v1537_v17  ;;  %v1426_v10 = vmax.f32 %v2776_v35, %v1235_v18  ;;  %v1982_v12 = vpop.f32.mrf.mxu0  ;;  %v2090_v32 = vpop.f32.mrf.mxu1 }
 0x124   :  { %1577 = vst.msk [vmem:[%s3150_s3 + $0x28] sm:$0xff] %vm1571_vm2, %v1540_v31  ;;  %v1539_v33 = vmax.f32 %v1503_v9, 0.0  ;;  %v1506_v24 = vadd.f32 %v2895_v11, %v1463_v22  ;;  %v1393_v25 = vmax.f32 %v2778_v36, %v1982_v12  ;;  %v1429_v34 = vmax.f32 %v2780_v37, %v2090_v32 }
 0x125   :  { %v1462_v8 = vmax.f32 %v1390_v23, %v1426_v10  ;;  %v885_v7 = vpop.f32.mrf.mxu0  ;;  %v1245_v6 = vpop.f32.mrf.mxu1 }
 0x126   :  { %1576 = vst.msk [vmem:[%s3150_s3 + $0x20] sm:$0xff] %vm1571_vm2, %v1539_v33  ;;  %v1542_v35 = vmax.f32 %v1506_v24, 0.0  ;;  %v1465_v13 = vmax.f32 %v1393_v25, %v1429_v34  ;;  %v1392_v14 = vmax.f32 %v2782_v38, %v885_v7  ;;  %v1428_v26 = vmax.f32 %v2784_v39, %v1245_v6 }
 0x127   :  { %v1505_v27 = vadd.f32 %v2895_v11, %v1462_v8  ;;  %v1985_v15 = vpop.f32.mrf.mxu0  ;;  %v2093_v36 = vpop.f32.mrf.mxu1 }
 0x128   :  { %1579 = vst.msk [vmem:[%s3150_s3 + $0x38] sm:$0xff] %vm1571_vm2, %v1542_v35  ;;  %v1508_v37 = vadd.f32 %v2895_v11, %v1465_v13  ;;  %v1464_v4 = vmax.f32 %v1392_v14, %v1428_v26  ;;  %v1395_v5 = vmax.f32 %v2786_v40, %v1985_v15  ;;  %v1431_v16 = vmax.f32 %v2788_v41, %v2093_v36 }
 0x129   :  { %v1541_v28 = vmax.f32 %v1505_v27, 0.0  ;;  %v895_v38 = vpop.f32.mrf.mxu0  ;;  %v1255_v29 = vpop.f32.mrf.mxu1 }
 0x12a   :  { %v1544_v39 = vmax.f32 %v1508_v37, 0.0  ;;  %v1507_v19 = vadd.f32 %v2895_v11, %v1464_v4  ;;  %v1467_v20 = vmax.f32 %v1395_v5, %v1431_v16  ;;  %v1394_v21 = vmax.f32 %v2790_v42, %v895_v38 }
 0x12b   :  { %1578 = vst.msk [vmem:[%s3150_s3 + $0x30] sm:$0xff] %vm1571_vm2, %v1541_v28  ;;  %v1430_v17 = vmax.f32 %v2792_v43, %v1255_v29  ;;  %v1988_v30 = vpop.f32.mrf.mxu0  ;;  %v2096_v40 = vpop.f32.mrf.mxu1 }
 0x12c   :  { %1581 = vst.msk [vmem:[%s3150_s3 + $0x48] sm:$0xff] %vm1571_vm2, %v1544_v39  ;;  %v1543_v41 = vmax.f32 %v1507_v19, 0.0  ;;  %v1510_v18 = vadd.f32 %v2895_v11, %v1467_v20  ;;  %v1397_v31 = vmax.f32 %v2794_v44, %v1988_v30  ;;  %v1433_v42 = vmax.f32 %v2796_v45, %v2096_v40 }
 0x12d   :  { %v1466_v9 = vmax.f32 %v1394_v21, %v1430_v17  ;;  %v905_v22 = vpop.f32.mrf.mxu0  ;;  %v1265_v23 = vpop.f32.mrf.mxu1 }
 0x12e   :  { %1580 = vst.msk [vmem:[%s3150_s3 + $0x40] sm:$0xff] %vm1571_vm2, %v1543_v41  ;;  %v1546_v43 = vmax.f32 %v1510_v18, 0.0  ;;  %v1469_v10 = vmax.f32 %v1397_v31, %v1433_v42  ;;  %v1396_v12 = vmax.f32 %v2798_v46, %v905_v22  ;;  %v1432_v32 = vmax.f32 %v2800_v47, %v1265_v23 }
 0x12f   :  { %v1509_v33 = vadd.f32 %v2895_v11, %v1466_v9  ;;  %v1991_v24 = vpop.f32.mrf.mxu0  ;;  %v2099_v44 = vpop.f32.mrf.mxu1 }
 0x130   :  { %1583 = vst.msk [vmem:[%s3150_s3 + $0x58] sm:$0xff] %vm1571_vm2, %v1546_v43  ;;  %v1512_v45 = vadd.f32 %v2895_v11, %v1469_v10  ;;  %v1468_v25 = vmax.f32 %v1396_v12, %v1432_v32  ;;  %v1399_v34 = vmax.f32 %v2802_v48, %v1991_v24  ;;  %v1435_v8 = vmax.f32 %v2804_v49, %v2099_v44 }
 0x131   :  { %v1545_v7 = vmax.f32 %v1509_v33, 0.0  ;;  %v915_v46 = vpop.f32.mrf.mxu0  ;;  %v1275_v6 = vpop.f32.mrf.mxu1 }
 0x132   :  { %v1548_v47 = vmax.f32 %v1512_v45, 0.0  ;;  %v1511_v35 = vadd.f32 %v2895_v11, %v1468_v25  ;;  %v1471_v13 = vmax.f32 %v1399_v34, %v1435_v8  ;;  %v1398_v14 = vmax.f32 %v2806_v50, %v915_v46 }
 0x133   :  { %1582 = vst.msk [vmem:[%s3150_s3 + $0x50] sm:$0xff] %vm1571_vm2, %v1545_v7  ;;  %v1434_v26 = vmax.f32 %v2808_v51, %v1275_v6  ;;  %v1994_v27 = vpop.f32.mrf.mxu0  ;;  %v2102_v48 = vpop.f32.mrf.mxu1 }
 0x134   :  { %1585 = vst.msk [vmem:[%s3150_s3 + $0x68] sm:$0xff] %vm1571_vm2, %v1548_v47  ;;  %v1547_v49 = vmax.f32 %v1511_v35, 0.0  ;;  %v1514_v15 = vadd.f32 %v2895_v11, %v1471_v13  ;;  %v1401_v36 = vmax.f32 %v2810_v52, %v1994_v27  ;;  %v1437_v50 = vmax.f32 %v2812_v53, %v2102_v48 }
 0x135   :  { %v1470_v37 = vmax.f32 %v1398_v14, %v1434_v26  ;;  %v925_v4 = vpop.f32.mrf.mxu0  ;;  %v1285_v5 = vpop.f32.mrf.mxu1  ;;  %v3175_v26 = vld [vmem:[#allocation2_spill] sm:$0xff] }
 0x136   :  { %1584 = vst.msk [vmem:[%s3150_s3 + $0x60] sm:$0xff] %vm1571_vm2, %v1547_v49  ;;  %v1550_v51 = vmax.f32 %v1514_v15, 0.0  ;;  %v1473_v16 = vmax.f32 %v1401_v36, %v1437_v50  ;;  %v1400_v28 = vmax.f32 %v2814_v54, %v925_v4  ;;  %v1436_v38 = vmax.f32 %v2816_v55, %v1285_v5  ;;  %v3178_v5 = vld [vmem:[#allocation5_spill] sm:$0xff] }
 0x137   :  { %v1513_v29 = vadd.f32 %v2895_v11, %v1470_v37  ;;  %v1997_v39 = vpop.f32.mrf.mxu0  ;;  %v2105_v52 = vpop.f32.mrf.mxu1  ;;  %v3177_v37 = vld [vmem:[#allocation4_spill] sm:$0xff] }
 0x138   :  { %1587 = vst.msk [vmem:[%s3150_s3 + $0x78] sm:$0xff] %vm1571_vm2, %v1550_v51  ;;  %v1516_v53 = vadd.f32 %v2895_v11, %v1473_v16  ;;  %v1472_v19 = vmax.f32 %v1400_v28, %v1436_v38  ;;  %v1403_v20 = vmax.f32 %v2818_v56, %v1997_v39  ;;  %v1439_v21 = vmax.f32 %v2820_v57, %v2105_v52  ;;  %v3179_v52 = vld [vmem:[#allocation6_spill] sm:$0xff] }
 0x139   :  { %v1549_v17 = vmax.f32 %v1513_v29, 0.0  ;;  %v935_v54 = vpop.f32.mrf.mxu0  ;;  %v1295_v30 = vpop.f32.mrf.mxu1 }
 0x13a   :  { %v1552_v55 = vmax.f32 %v1516_v53, 0.0  ;;  %v1515_v40 = vadd.f32 %v2895_v11, %v1472_v19  ;;  %v1475_v41 = vmax.f32 %v1403_v20, %v1439_v21  ;;  %v1402_v18 = vmax.f32 %v2822_v58, %v935_v54  ;;  %v3180_v19 = vld [vmem:[#allocation7_spill] sm:$0xff] }
 0x13b   :  { %1586 = vst.msk [vmem:[%s3150_s3 + $0x70] sm:$0xff] %vm1571_vm2, %v1549_v17  ;;  %v1438_v31 = vmax.f32 %v2824_v59, %v1295_v30  ;;  %v2000_v42 = vpop.f32.mrf.mxu0  ;;  %v2108_v56 = vpop.f32.mrf.mxu1 }
 0x13c   :  { %1589 = vst.msk [vmem:[%s3150_s3 + $0x88] sm:$0xff] %vm1571_vm2, %v1552_v55  ;;  %v1551_v57 = vmax.f32 %v1515_v40, 0.0  ;;  %v1518_v9 = vadd.f32 %v2895_v11, %v1475_v41  ;;  %v1405_v22 = vmax.f32 %v2826_v60, %v2000_v42  ;;  %v1441_v58 = vmax.f32 %v2828_v61, %v2108_v56  ;;  %v3181_v41 = vld [vmem:[#allocation8_spill] sm:$0xff] }
 0x13d   :  { %v1474_v23 = vmax.f32 %v1402_v18, %v1438_v31  ;;  %v945_v43 = vpop.f32.mrf.mxu0  ;;  %v1305_v10 = vpop.f32.mrf.mxu1  ;;  %v3182_v31 = vld [vmem:[#allocation9_spill] sm:$0xff] }
 0x13e   :  { %1588 = vst.msk [vmem:[%s3150_s3 + $0x80] sm:$0xff] %vm1571_vm2, %v1551_v57  ;;  %v1554_v59 = vmax.f32 %v1518_v9, 0.0  ;;  %v1477_v12 = vmax.f32 %v1405_v22, %v1441_v58  ;;  %v1404_v32 = vmax.f32 %v2830_v62, %v945_v43  ;;  %v1440_v33 = vmax.f32 %v2832_v63, %v1305_v10  ;;  %v3183_v58 = vld [vmem:[#allocation10_spill] sm:$0xff]  ;;  %v3184_v43 = vld [vmem:[#allocation11_spill] sm:$0xff] }
 0x13f   :  { %v1517_v24 = vadd.f32 %v2895_v11, %v1474_v23  ;;  %v2003_v44 = vpop.f32.mrf.mxu0  ;;  %v2111_v60 = vpop.f32.mrf.mxu1 }
 0x140   :  { %1591 = vst.msk [vmem:[%s3150_s3 + $0x98] sm:$0xff] %vm1571_vm2, %v1554_v59  ;;  %v1520_v61 = vadd.f32 %v2895_v11, %v1477_v12  ;;  %v1476_v45 = vmax.f32 %v1404_v32, %v1440_v33  ;;  %v1407_v25 = vmax.f32 %v2834_v0, %v2003_v44  ;;  %v1443_v34 = vmax.f32 %v2836_v1, %v2111_v60  ;;  %v3185_v44 = vld [vmem:[#allocation12_spill] sm:$0xff] }
 0x141   :  { %v1553_v8 = vmax.f32 %v1517_v24, 0.0  ;;  %v955_v62 = vpop.f32.mrf.mxu0  ;;  %v1315_v7 = vpop.f32.mrf.mxu1 }
 0x142   :  { %v1556_v63 = vmax.f32 %v1520_v61, 0.0  ;;  %v1519_v46 = vadd.f32 %v2895_v11, %v1476_v45  ;;  %v1479_v6 = vmax.f32 %v1407_v25, %v1443_v34  ;;  %v1406_v47 = vmax.f32 %v2838_v2, %v955_v62  ;;  %v3176_v2 = vld [vmem:[#allocation3_spill] sm:$0xff]  ;;  %v3186_v61 = vld [vmem:[#allocation13_spill] sm:$0xff] }
 0x143   :  { %1590 = vst.msk [vmem:[%s3150_s3 + $0x90] sm:$0xff] %vm1571_vm2, %v1553_v8  ;;  %v1442_v35 = vmax.f32 %v2840_v3, %v1315_v7  ;;  %v2006_v13 = vpop.f32.mrf.mxu0  ;;  %v2114_v0 = vpop.f32.mrf.mxu1 }
 0x144   :  { %1593 = vst.msk [vmem:[%s3150_s3 + $0xa8] sm:$0xff] %vm1571_vm2, %v1556_v63  ;;  %v1555_v1 = vmax.f32 %v1519_v46, 0.0  ;;  %v1522_v14 = vadd.f32 %v2895_v11, %v1479_v6  ;;  %v1409_v27 = vmax.f32 %v3175_v26, %v2006_v13  ;;  %v1445_v48 = vmax.f32 %v3176_v2, %v2114_v0  ;;  %v3187_v63 = vld [vmem:[#allocation14_spill] sm:$0xff]  ;;  %v3188_v6 = vld [vmem:[#allocation15_spill] sm:$0xff] }
 0x145   :  { %v1478_v49 = vmax.f32 %v1406_v47, %v1442_v35  ;;  %v965_v15 = vpop.f32.mrf.mxu0  ;;  %v1325_v36 = vpop.f32.mrf.mxu1 }
 0x146   :  { %1592 = vst.msk [vmem:[%s3150_s3 + $0xa0] sm:$0xff] %vm1571_vm2, %v1555_v1  ;;  %v1558_v3 = vmax.f32 %v1522_v14, 0.0  ;;  %v1481_v50 = vmax.f32 %v1409_v27, %v1445_v48  ;;  %v1408_v4 = vmax.f32 %v3177_v37, %v965_v15  ;;  %v1444_v51 = vmax.f32 %v3178_v5, %v1325_v36  ;;  %v3189_v27 = vld [vmem:[#allocation16_spill] sm:$0xff]  ;;  %v3190_v48 = vld [vmem:[#allocation17_spill] sm:$0xff]  ;;  %v3191_v37 = vld [vmem:[#allocation18_spill] sm:$0xff] }
 0x147   :  { %v1521_v16 = vadd.f32 %v2895_v11, %v1478_v49  ;;  %v2009_v28 = vpop.f32.mrf.mxu0  ;;  %v2117_v38 = vpop.f32.mrf.mxu1  ;;  %v3192_v5 = vld [vmem:[#allocation19_spill] sm:$0xff] }
 0x148   :  { %1595 = vst.msk [vmem:[%s3150_s3 + $0xb8] sm:$0xff] %vm1571_vm2, %v1558_v3  ;;  %v1524_v29 = vadd.f32 %v2895_v11, %v1481_v50  ;;  %v1480_v39 = vmax.f32 %v1408_v4, %v1444_v51  ;;  %v1411_v53 = vmax.f32 %v3179_v52, %v2009_v28  ;;  %v1447_v20 = vmax.f32 %v3180_v19, %v2117_v38  ;;  %v3193_v52 = vld [vmem:[#allocation20_spill] sm:$0xff]  ;;  %v3194_v19 = vld [vmem:[#allocation21_spill] sm:$0xff] }
 0x149   :  { %v1557_v21 = vmax.f32 %v1521_v16, 0.0  ;;  %v975_v17 = vpop.f32.mrf.mxu0  ;;  %v1335_v54 = vpop.f32.mrf.mxu1 }
 0x14a   :  { %v1560_v30 = vmax.f32 %v1524_v29, 0.0  ;;  %v1523_v55 = vadd.f32 %v2895_v11, %v1480_v39  ;;  %v1483_v40 = vmax.f32 %v1411_v53, %v1447_v20  ;;  %v1410_v18 = vmax.f32 %v3181_v41, %v975_v17 }
 0x14b   :  { %1594 = vst.msk [vmem:[%s3150_s3 + $0xb0] sm:$0xff] %vm1571_vm2, %v1557_v21  ;;  %v1446_v42 = vmax.f32 %v3182_v31, %v1335_v54  ;;  %v2012_v56 = vpop.f32.mrf.mxu0  ;;  %v2120_v57 = vpop.f32.mrf.mxu1 }
 0x14c   :  { %1597 = vst.msk [vmem:[%s3150_s3 + $0xc8] sm:$0xff] %vm1571_vm2, %v1560_v30  ;;  %v1559_v9 = vmax.f32 %v1523_v55, 0.0  ;;  %v1526_v22 = vadd.f32 %v2895_v11, %v1483_v40  ;;  %v1413_v23 = vmax.f32 %v3183_v58, %v2012_v56  ;;  %v1449_v10 = vmax.f32 %v3184_v43, %v2120_v57  ;;  %v3195_v40 = vld [vmem:[#allocation22_spill] sm:$0xff] }
 0x14d   :  { %v1482_v59 = vmax.f32 %v1410_v18, %v1446_v42  ;;  %v985_v12 = vpop.f32.mrf.mxu0  ;;  %v1345_v32 = vpop.f32.mrf.mxu1  ;;  %v3196_v18 = vld [vmem:[#allocation23_spill] sm:$0xff] }
 0x14e   :  { %1596 = vst.msk [vmem:[%s3150_s3 + $0xc0] sm:$0xff] %vm1571_vm2, %v1559_v9  ;;  %v1562_v33 = vmax.f32 %v1526_v22, 0.0  ;;  %v1485_v24 = vmax.f32 %v1413_v23, %v1449_v10  ;;  %v1412_v60 = vmax.f32 %v3185_v44, %v985_v12  ;;  %v1448_v45 = vmax.f32 %v3186_v61, %v1345_v32  ;;  %v3197_v23 = vld [vmem:[#allocation24_spill] sm:$0xff]  ;;  %v3198_v10 = vld [vmem:[#allocation25_spill] sm:$0xff] }
 0x14f   :  { %v1525_v25 = vadd.f32 %v2895_v11, %v1482_v59  ;;  %v2015_v34 = vpop.f32.mrf.mxu0  ;;  %v2123_v8 = vpop.f32.mrf.mxu1 }
 0x150   :  { %1599 = vst.msk [vmem:[%s3150_s3 + $0xd8] sm:$0xff] %vm1571_vm2, %v1562_v33  ;;  %v1528_v62 = vadd.f32 %v2895_v11, %v1485_v24  ;;  %v1484_v7 = vmax.f32 %v1412_v60, %v1448_v45  ;;  %v1415_v46 = vmax.f32 %v3187_v63, %v2015_v34  ;;  %v1451_v47 = vmax.f32 %v3188_v6, %v2123_v8 }
 0x151   :  { %v1561_v35 = vmax.f32 %v1525_v25, 0.0  ;;  %v995_v13 = vpop.f32.mrf.mxu0  ;;  %v1355_v0 = vpop.f32.mrf.mxu1 }
 0x152   :  { %v1564_v1 = vmax.f32 %v1528_v62, 0.0  ;;  %v1527_v14 = vadd.f32 %v2895_v11, %v1484_v7  ;;  %v1487_v26 = vmax.f32 %v1415_v46, %v1451_v47  ;;  %v1414_v2 = vmax.f32 %v3189_v27, %v995_v13 }
 0x153   :  { %1598 = vst.msk [vmem:[%s3150_s3 + $0xd0] sm:$0xff] %vm1571_vm2, %v1561_v35  ;;  %v1450_v49 = vmax.f32 %v3190_v48, %v1355_v0  ;;  %v2018_v15 = vpop.f32.mrf.mxu0  ;;  %v2126_v36 = vpop.f32.mrf.mxu1 }
 0x154   :  { %1601 = vst.msk [vmem:[%s3150_s3 + $0xe8] sm:$0xff] %vm1571_vm2, %v1564_v1  ;;  %v1563_v3 = vmax.f32 %v1527_v14, 0.0  ;;  %v1530_v50 = vadd.f32 %v2895_v11, %v1487_v26  ;;  %v1417_v4 = vmax.f32 %v3191_v37, %v2018_v15  ;;  %v1453_v51 = vmax.f32 %v3192_v5, %v2126_v36 }
 0x155   :  { %v1486_v16 = vmax.f32 %v1414_v2, %v1450_v49  ;;  %v1005_v28 = vpop.f32.mrf.mxu0  ;;  %v1365_v38 = vpop.f32.mrf.mxu1 }
 0x156   :  { %1600 = vst.msk [vmem:[%s3150_s3 + $0xe0] sm:$0xff] %vm1571_vm2, %v1563_v3  ;;  %v1566_v29 = vmax.f32 %v1530_v50, 0.0  ;;  %v1489_v39 = vmax.f32 %v1417_v4, %v1453_v51  ;;  %v1416_v53 = vmax.f32 %v3193_v52, %v1005_v28  ;;  %v1452_v20 = vmax.f32 %v3194_v19, %v1365_v38 }
 0x157   :  { %v1529_v21 = vadd.f32 %v2895_v11, %v1486_v16  ;;  %v2021_v17 = vpop.f32.mrf.mxu0  ;;  %v2129_v54 = vpop.f32.mrf.mxu1 }
 0x158   :  { %1603 = vst.msk [vmem:[%s3150_s3 + $0xf8] sm:$0xff] %vm1571_vm2, %v1566_v29  ;;  %v1532_v30 = vadd.f32 %v2895_v11, %v1489_v39  ;;  %v1488_v55 = vmax.f32 %v1416_v53, %v1452_v20  ;;  %v1419_v41 = vmax.f32 %v3195_v40, %v2021_v17  ;;  %v1455_v31 = vmax.f32 %v3196_v18, %v2129_v54 }
 0x159   :  { %v1565_v42 = vmax.f32 %v1529_v21, 0.0  ;;  %v1015_v56 = vpop.f32.mrf.mxu0  ;;  %v1375_v57 = vpop.f32.mrf.mxu1 }
 0x15a   :  { %v1568_v9 = vmax.f32 %v1532_v30, 0.0  ;;  %v1531_v22 = vadd.f32 %v2895_v11, %v1488_v55  ;;  %v1491_v58 = vmax.f32 %v1419_v41, %v1455_v31  ;;  %v1418_v43 = vmax.f32 %v3197_v23, %v1015_v56 }
 0x15b   :  { %1602 = vst.msk [vmem:[%s3150_s3 + $0xf0] sm:$0xff] %vm1571_vm2, %v1565_v42  ;;  %v1454_v59 = vmax.f32 %v3198_v10, %v1375_v57 }
 0x15c   :  { %1605 = vst.msk [vmem:[%s3150_s3 + $0x108] sm:$0xff] %vm1571_vm2, %v1568_v9  ;;  %v1567_v12 = vmax.f32 %v1531_v22, 0.0  ;;  %v1534_v32 = vadd.f32 %v2895_v11, %v1491_v58 }
 0x15d   :  { %v1490_v33 = vmax.f32 %v1418_v43, %v1454_v59 }
 0x15e   :  { %1604 = vst.msk [vmem:[%s3150_s3 + $0x100] sm:$0xff] %vm1571_vm2, %v1567_v12  ;;  %v1570_v24 = vmax.f32 %v1534_v32, 0.0 }
 0x15f   :  { %v1533_v44 = vadd.f32 %v2895_v11, %v1490_v33 }
 0x160   :  { %1607 = vst.msk [vmem:[%s3150_s3 + $0x118] sm:$0xff] %vm1571_vm2, %v1570_v24 }
 0x161   :  { %v1569_v60 = vmax.f32 %v1533_v44, 0.0 }
 0x163   :  { %1606 = vst.msk [vmem:[%s3150_s3 + $0x110] sm:$0xff] %vm1571_vm2, %v1569_v60 }

// kernel: convnet_forward.4
= control target key start
LH: loop header
LB: loop body
LE: loop exit
PB: predicated region body
PF: predicated region fallthrough
CT: control target
= control target key end

     0   :  { %v681_v0 = vmov 0.0   ;;  %vm190_vm0 = vcmask 1043456   ;;  %vm141_vm1 = vcmask 949248   ;;  %vm511_vm2 = vcmask 326656   ;;  %s1336_s1 = inlined_call_operand.vmem [shape: f32[500,40], index: 1, kind: input, shape index: {}]   ;;  %s1337_s0 = inlined_call_operand.vmem [shape: f32[4,32,500], index: 0, kind: input, shape index: {}]   ;;  %s1338_s2 = inlined_call_operand.vmem [shape: f32[1,40], index: 2, kind: input, shape index: {}]   ;;  %s1339_s3 = inlined_call_operand.vmem [shape: f32[32,40], index: 3, kind: output, shape index: {}]  }
   0x1   :  { %618 = vmatprep.subr.mxu1 %v681_v0  ;;  %v109_v1 = vld [vmem:[%s1336_s1 + $0xf8] sm:$0xff]  ;;  %v108_v4 = vld [vmem:[%s1336_s1 + $0xf0] sm:$0xff]  ;;  %v107_v7 = vld [vmem:[%s1336_s1 + $0xe8] sm:$0xff] }
   0x2   :  { %v709_v2 = vld [vmem:[%s1336_s1 + $0x178] sm:$0xff]  ;;  %538 = vmatprep.subr.mxu0 %v109_v1  ;;  %v721_v5 = vld [vmem:[%s1336_s1 + $0x170] sm:$0xff]  ;;  %v733_v8 = vld [vmem:[%s1336_s1 + $0x168] sm:$0xff] }
   0x3   :  { %v93_v3 = vld [vmem:[%s1336_s1 + $0x78] sm:$0xff]  ;;  %649 = vmatpush1.msra.mxu1 %v709_v2  ;;  %v92_v6 = vld [vmem:[%s1336_s1 + $0x70] sm:$0xff]  ;;  %v91_v9 = vld [vmem:[%s1336_s1 + $0x68] sm:$0xff] }
   0x4   :  { %539 = vmatpush3.msra.mxu0 %v93_v3  ;;  %619 = vmatprep.subr.mxu1 %v681_v0  ;;  %v106_v10 = vld [vmem:[%s1336_s1 + $0xe0] sm:$0xff]  ;;  %v105_v13 = vld [vmem:[%s1336_s1 + $0xd8] sm:$0xff]  ;;  %v104_v16 = vld [vmem:[%s1336_s1 + $0xd0] sm:$0xff] }
   0x5   :  { %540 = vmatprep.subr.mxu0 %v108_v4  ;;  %650 = vmatpush1.msra.mxu1 %v721_v5  ;;  %v746_v11 = vld [vmem:[%s1336_s1 + $0x160] sm:$0xff]  ;;  %v759_v14 = vld [vmem:[%s1336_s1 + $0x158] sm:$0xff]  ;;  %v772_v17 = vld [vmem:[%s1336_s1 + $0x150] sm:$0xff] }
   0x6   :  { %541 = vmatpush3.msra.mxu0 %v92_v6  ;;  %620 = vmatprep.subr.mxu1 %v681_v0  ;;  %v90_v12 = vld [vmem:[%s1336_s1 + $0x60] sm:$0xff]  ;;  %v89_v15 = vld [vmem:[%s1336_s1 + $0x58] sm:$0xff]  ;;  %v88_v18 = vld [vmem:[%s1336_s1 + $0x50] sm:$0xff] }
   0x7   :  { %542 = vmatprep.subr.mxu0 %v107_v7  ;;  %651 = vmatpush1.msra.mxu1 %v733_v8  ;;  %v103_v19 = vld [vmem:[%s1336_s1 + $0xc8] sm:$0xff]  ;;  %v102_v22 = vld [vmem:[%s1336_s1 + $0xc0] sm:$0xff]  ;;  %v101_v25 = vld [vmem:[%s1336_s1 + $0xb8] sm:$0xff] }
   0x8   :  { %543 = vmatpush3.msra.mxu0 %v91_v9  ;;  %621 = vmatprep.subr.mxu1 %v681_v0  ;;  %v785_v20 = vld [vmem:[%s1336_s1 + $0x148] sm:$0xff]  ;;  %v798_v23 = vld [vmem:[%s1336_s1 + $0x140] sm:$0xff]  ;;  %v811_v26 = vld [vmem:[%s1336_s1 + $0x138] sm:$0xff] }
   0x9   :  { %544 = vmatprep.subr.mxu0 %v106_v10  ;;  %652 = vmatpush1.msra.mxu1 %v746_v11  ;;  %v87_v21 = vld [vmem:[%s1336_s1 + $0x48] sm:$0xff]  ;;  %v86_v24 = vld [vmem:[%s1336_s1 + $0x40] sm:$0xff]  ;;  %v85_v27 = vld [vmem:[%s1336_s1 + $0x38] sm:$0xff] }
   0xa   :  { %545 = vmatpush3.msra.mxu0 %v90_v12  ;;  %622 = vmatprep.subr.mxu1 %v681_v0  ;;  %v100_v28 = vld [vmem:[%s1336_s1 + $0xb0] sm:$0xff]  ;;  %v99_v31 = vld [vmem:[%s1336_s1 + $0xa8] sm:$0xff]  ;;  %v98_v34 = vld [vmem:[%s1336_s1 + $0xa0] sm:$0xff] }
   0xb   :  { %546 = vmatprep.subr.mxu0 %v105_v13  ;;  %653 = vmatpush1.msra.mxu1 %v759_v14  ;;  %v824_v29 = vld [vmem:[%s1336_s1 + $0x130] sm:$0xff]  ;;  %v837_v32 = vld [vmem:[%s1336_s1 + $0x128] sm:$0xff]  ;;  %v850_v35 = vld [vmem:[%s1336_s1 + $0x120] sm:$0xff] }
   0xc   :  { %547 = vmatpush3.msra.mxu0 %v89_v15  ;;  %623 = vmatprep.subr.mxu1 %v681_v0  ;;  %v84_v30 = vld [vmem:[%s1336_s1 + $0x30] sm:$0xff]  ;;  %v83_v33 = vld [vmem:[%s1336_s1 + $0x28] sm:$0xff]  ;;  %v82_v36 = vld [vmem:[%s1336_s1 + $0x20] sm:$0xff] }
   0xd   :  { %548 = vmatprep.subr.mxu0 %v104_v16  ;;  %654 = vmatpush1.msra.mxu1 %v772_v17  ;;  %v97_v37 = vld [vmem:[%s1336_s1 + $0x98] sm:$0xff]  ;;  %v96_v40 = vld [vmem:[%s1336_s1 + $0x90] sm:$0xff]  ;;  %v95_v43 = vld [vmem:[%s1336_s1 + $0x88] sm:$0xff] }
   0xe   :  { %549 = vmatpush3.msra.mxu0 %v88_v18  ;;  %624 = vmatprep.subr.mxu1 %v681_v0  ;;  %v863_v38 = vld [vmem:[%s1336_s1 + $0x118] sm:$0xff]  ;;  %v876_v41 = vld [vmem:[%s1336_s1 + $0x110] sm:$0xff]  ;;  %v889_v44 = vld [vmem:[%s1336_s1 + $0x108] sm:$0xff] }
   0xf   :  { %550 = vmatprep.subr.mxu0 %v103_v19  ;;  %655 = vmatpush1.msra.mxu1 %v785_v20  ;;  %v81_v39 = vld [vmem:[%s1336_s1 + $0x18] sm:$0xff]  ;;  %v80_v42 = vld [vmem:[%s1336_s1 + $0x10] sm:$0xff]  ;;  %v79_v45 = vld [vmem:[%s1336_s1 + $0x8] sm:$0xff] }
  0x10   :  { %551 = vmatpush3.msra.mxu0 %v87_v21  ;;  %625 = vmatprep.subr.mxu1 %v681_v0  ;;  %v94_v46 = vld [vmem:[%s1336_s1 + $0x80] sm:$0xff]  ;;  %v15_v49 = vld [vmem:[%s1337_s0 + $0x8] sm:$0xff]  ;;  %v919_v51 = vld [vmem:[%s1336_s1 + $0x1f0] sm:$0xf] }
  0x11   :  { %552 = vmatprep.subr.mxu0 %v102_v22  ;;  %656 = vmatpush1.msra.mxu1 %v798_v23  ;;  %v902_v47 = vld [vmem:[%s1336_s1 + $0x100] sm:$0xff]  ;;  %v19_v52 = vld [vmem:[%s1337_s0 + $0x28] sm:$0xff]  ;;  %v948_v56 = vld [vmem:[%s1336_s1 + $0x1d8] sm:$0xff] }
  0x12   :  { %553 = vmatpush3.msra.mxu0 %v86_v24  ;;  %626 = vmatprep.subr.mxu1 %v681_v0  ;;  %v78_v48 = vld [vmem:[%s1336_s1] sm:$0xff]  ;;  %v928_v53 = vld [vmem:[%s1336_s1 + $0x1e8] sm:$0xff]  ;;  %v965_v59 = vld [vmem:[%s1336_s1 + $0x1d0] sm:$0xff] }
  0x13   :  { %554 = vmatprep.subr.mxu0 %v101_v25  ;;  %657 = vmatpush1.msra.mxu1 %v811_v26  ;;  %v14_v50 = vld [vmem:[%s1337_s0] sm:$0xff]  ;;  %v23_v57 = vld [vmem:[%s1337_s0 + $0x48] sm:$0xff]  ;;  %v996_v1 = vld [vmem:[%s1336_s1 + $0x1b8] sm:$0xff] }
  0x14   :  { %555 = vmatpush3.msra.mxu0 %v85_v27  ;;  %627 = vmatprep.subr.mxu1 %v681_v0  ;;  %v18_v54 = vld [vmem:[%s1337_s0 + $0x20] sm:$0xff]  ;;  %v972_v60 = vld [vmem:[%s1336_s1 + $0x1c8] sm:$0xff]  ;;  %v1013_v4 = vld [vmem:[%s1336_s1 + $0x1b0] sm:$0xff] }
  0x15   :  { %556 = vmatprep.subr.mxu0 %v100_v28  ;;  %658 = vmatpush1.msra.mxu1 %v824_v29  ;;  %v940_v55 = vld [vmem:[%s1336_s1 + $0x1e0] sm:$0xff]  ;;  %v27_v61 = vld [vmem:[%s1337_s0 + $0x68] sm:$0xff]  ;;  %v1044_v9 = vld [vmem:[%s1336_s1 + $0x198] sm:$0xff] }
  0x16   :  { %557 = vmatpush3.msra.mxu0 %v84_v30  ;;  %628 = vmatprep.subr.mxu1 %v681_v0  ;;  %v22_v58 = vld [vmem:[%s1337_s0 + $0x40] sm:$0xff]  ;;  %v35_v6 = vld [vmem:[%s1337_s0 + $0xa8] sm:$0xff]  ;;  %v1061_v12 = vld [vmem:[%s1336_s1 + $0x190] sm:$0xff] }
  0x17   :  { %558 = vmatprep.subr.mxu0 %v99_v31  ;;  %659 = vmatpush1.msra.mxu1 %v837_v32  ;;  %v26_v62 = vld [vmem:[%s1337_s0 + $0x60] sm:$0xff]  ;;  %v39_v10 = vld [vmem:[%s1337_s0 + $0xc8] sm:$0xff]  ;;  %v28_v18 = vld [vmem:[%s1337_s0 + $0x70] sm:$0xff] }
  0x18   :  { %559 = vmatpush3.msra.mxu0 %v83_v33  ;;  %629 = vmatprep.subr.mxu1 %v681_v0  ;;  %v989_v63 = vld [vmem:[%s1336_s1 + $0x1c0] sm:$0xff]  ;;  %v1068_v13 = vld [vmem:[%s1336_s1 + $0x188] sm:$0xff]  ;;  %v33_v21 = vld [vmem:[%s1337_s0 + $0x98] sm:$0xff] }
  0x19   :  { %560 = vmatprep.subr.mxu0 %v98_v34  ;;  %660 = vmatpush1.msra.mxu1 %v850_v35  ;;  %v30_v3 = vld [vmem:[%s1337_s0 + $0x80] sm:$0xff]  ;;  %v47_v19 = vld [vmem:[%s1337_s0 + $0x108] sm:$0xff]  ;;  %v32_v22 = vld [vmem:[%s1337_s0 + $0x90] sm:$0xff] }
  0x1a   :  { %561 = vmatpush3.msra.mxu0 %v82_v36  ;;  %630 = vmatprep.subr.mxu1 %v681_v0  ;;  %v34_v7 = vld [vmem:[%s1337_s0 + $0xa0] sm:$0xff]  ;;  %v37_v25 = vld [vmem:[%s1337_s0 + $0xb8] sm:$0xff]  ;;  %v55_v27 = vld [vmem:[%s1337_s0 + $0x148] sm:$0xff] }
  0x1b   :  { %562 = vmatprep.subr.mxu0 %v97_v37  ;;  %661 = vmatpush1.msra.mxu1 %v863_v38  ;;  %v42_v15 = vld [vmem:[%s1337_s0 + $0xe0] sm:$0xff]  ;;  %v40_v30 = vld [vmem:[%s1337_s0 + $0xd0] sm:$0xff]  ;;  %v59_v31 = vld [vmem:[%s1337_s0 + $0x168] sm:$0xff] }
  0x1c   :  { %563 = vmatpush3.msra.mxu0 %v81_v39  ;;  %631 = vmatprep.subr.mxu1 %v681_v0  ;;  %v1085_v16 = vld [vmem:[%s1336_s1 + $0x180] sm:$0xff]  ;;  %v45_v33 = vld [vmem:[%s1337_s0 + $0xf8] sm:$0xff]  ;;  %v44_v34 = vld [vmem:[%s1337_s0 + $0xf0] sm:$0xff] }
  0x1d   :  { %564 = vmatprep.subr.mxu0 %v96_v40  ;;  %662 = vmatpush1.msra.mxu1 %v876_v41  ;;  %v50_v24 = vld [vmem:[%s1337_s0 + $0x120] sm:$0xff]  ;;  %v49_v37 = vld [vmem:[%s1337_s0 + $0x118] sm:$0xff]  ;;  %v67_v39 = vld [vmem:[%s1337_s0 + $0x1a8] sm:$0xff] }
  0x1e   :  { %565 = vmatpush3.msra.mxu0 %v80_v42  ;;  %632 = vmatprep.subr.mxu1 %v681_v0  ;;  %v54_v28 = vld [vmem:[%s1337_s0 + $0x140] sm:$0xff]  ;;  %v52_v42 = vld [vmem:[%s1337_s0 + $0x130] sm:$0xff] }
  0x1f   :  { %566 = vmatprep.subr.mxu0 %v95_v43  ;;  %663 = vmatpush1.msra.mxu1 %v889_v44  ;;  %v62_v36 = vld [vmem:[%s1337_s0 + $0x180] sm:$0xff]  ;;  %v71_v43 = vld [vmem:[%s1337_s0 + $0x1c8] sm:$0xff] }
  0x20   :  { %567 = vmatpush3.msra.mxu0 %v79_v45  ;;  %633 = vmatprep.subr.mxu1 %v681_v0  ;;  %v66_v40 = vld [vmem:[%s1337_s0 + $0x1a0] sm:$0xff]  ;;  %v57_v45 = vld [vmem:[%s1337_s0 + $0x158] sm:$0xff] }
  0x21   :  { %568 = vmatprep.subr.mxu0 %v94_v46  ;;  %664 = vmatpush1.msra.mxu1 %v902_v47  ;;  %v56_v46 = vld [vmem:[%s1337_s0 + $0x150] sm:$0xff] }
  0x22   :  { %569 = vmatpush3.msra.mxu0 %v78_v48  ;;  %258 = vmatprep.mubr.f32.mxu0 %v15_v49  ;;  %v74_v48 = vld [vmem:[%s1337_s0 + $0x1e0] sm:$0xff]  ;;  %v61_v49 = vld [vmem:[%s1337_s0 + $0x178] sm:$0xff] }
  0x23   :  { %634 = vmatprep.subr.mxu1 %v681_v0  ;;  %259 = vmatmul.mubr.f32.vlgmr.msra.gmra.mxu0 %v14_v50  ;;  %v60_v50 = vld [vmem:[%s1337_s0 + $0x170] sm:$0xff] }
  0x24   :  { %665 = vmatpush2.msk.msra.mxu1 %vm190_vm0, %v919_v51  ;;  %339 = vmatprep.subr.mxu0 %v681_v0 }
  0x25   :  { %635 = vmatprep.subr.mxu1 %v681_v0  ;;  %263 = vmatprep.mubr.f32.mxu0 %v19_v52  ;;  %v16_v52 = vld [vmem:[%s1337_s0 + $0x10] sm:$0xff] }
  0x26   :  { %666 = vmatpush2.msra.mxu1 %v928_v53  ;;  %340 = vmatpush1.msra.mxu0 %v709_v2  ;;  %v31_v2 = vld [vmem:[%s1337_s0 + $0x88] sm:$0xff] }
  0x27   :  { %636 = vmatprep.subr.mxu1 %v681_v0  ;;  %264 = vmatmul.mubr.f32.gmra.mxu0 %v18_v54  ;;  %v21_v54 = vld [vmem:[%s1337_s0 + $0x38] sm:$0xff] }
  0x28   :  { %341 = vmatprep.subr.mxu0 %v681_v0  ;;  %667 = vmatpush2.msra.mxu1 %v940_v55 }
  0x29   :  { %342 = vmatpush1.msra.mxu0 %v721_v5  ;;  %637 = vmatprep.subr.mxu1 %v681_v0  ;;  %v1020_v5 = vld [vmem:[%s1336_s1 + $0x1a8] sm:$0xff] }
  0x2a   :  { %343 = vmatprep.subr.mxu0 %v681_v0  ;;  %668 = vmatpush2.msra.mxu1 %v948_v56 }
  0x2b   :  { %268 = vmatprep.mubr.f32.mxu0 %v23_v57  ;;  %344 = vmatpush1.msra.mxu0 %v733_v8  ;;  %v1037_v8 = vld [vmem:[%s1336_s1 + $0x1a0] sm:$0xff]  ;;  %v25_v57 = vld [vmem:[%s1337_s0 + $0x58] sm:$0xff] }
  0x2c   :  { %638 = vmatprep.subr.mxu1 %v681_v0  ;;  %269 = vmatmul.mubr.f32.gmra.mxu0 %v22_v58  ;;  %v68_v58 = vld [vmem:[%s1337_s0 + $0x1b0] sm:$0xff] }
  0x2d   :  { %345 = vmatprep.subr.mxu0 %v681_v0  ;;  %669 = vmatpush2.msra.mxu1 %v965_v59 }
  0x2e   :  { %346 = vmatpush1.msra.mxu0 %v746_v11  ;;  %639 = vmatprep.subr.mxu1 %v681_v0  ;;  %v38_v11 = vld [vmem:[%s1337_s0 + $0xc0] sm:$0xff] }
  0x2f   :  { %347 = vmatprep.subr.mxu0 %v681_v0  ;;  %670 = vmatpush2.msra.mxu1 %v972_v60 }
  0x30   :  { %273 = vmatprep.mubr.f32.mxu0 %v27_v61  ;;  %348 = vmatpush1.msra.mxu0 %v759_v14  ;;  %v43_v14 = vld [vmem:[%s1337_s0 + $0xe8] sm:$0xff]  ;;  %v72_v61 = vld [vmem:[%s1337_s0 + $0x1d0] sm:$0xff] }
  0x31   :  { %640 = vmatprep.subr.mxu1 %v681_v0  ;;  %274 = vmatmul.mubr.f32.gmra.mxu0 %v26_v62  ;;  %v77_v62 = vld [vmem:[%s1337_s0 + $0x1f8] sm:$0xff] }
  0x32   :  { %349 = vmatprep.subr.mxu0 %v681_v0  ;;  %671 = vmatpush2.msra.mxu1 %v989_v63 }
  0x33   :  { %350 = vmatpush1.msra.mxu0 %v772_v17  ;;  %641 = vmatprep.subr.mxu1 %v681_v0  ;;  %v29_v17 = vld [vmem:[%s1337_s0 + $0x78] sm:$0xff] }
  0x34   :  { %351 = vmatprep.subr.mxu0 %v681_v0  ;;  %672 = vmatpush2.msra.mxu1 %v996_v1 }
  0x35   :  { %278 = vmatprep.mubr.f32.mxu0 %v31_v2  ;;  %352 = vmatpush1.msra.mxu0 %v785_v20  ;;  %v46_v20 = vld [vmem:[%s1337_s0 + $0x100] sm:$0xff] }
  0x36   :  { %642 = vmatprep.subr.mxu1 %v681_v0  ;;  %279 = vmatmul.mubr.f32.gmra.mxu0 %v30_v3 }
  0x37   :  { %353 = vmatprep.subr.mxu0 %v681_v0  ;;  %673 = vmatpush2.msra.mxu1 %v1013_v4 }
  0x38   :  { %354 = vmatpush1.msra.mxu0 %v798_v23  ;;  %643 = vmatprep.subr.mxu1 %v681_v0  ;;  %v51_v23 = vld [vmem:[%s1337_s0 + $0x128] sm:$0xff] }
  0x39   :  { %355 = vmatprep.subr.mxu0 %v681_v0  ;;  %674 = vmatpush2.msra.mxu1 %v1020_v5 }
  0x3a   :  { %283 = vmatprep.mubr.f32.mxu0 %v35_v6  ;;  %356 = vmatpush1.msra.mxu0 %v811_v26  ;;  %v36_v26 = vld [vmem:[%s1337_s0 + $0xb0] sm:$0xff] }
  0x3b   :  { %644 = vmatprep.subr.mxu1 %v681_v0  ;;  %284 = vmatmul.mubr.f32.gmra.mxu0 %v34_v7 }
  0x3c   :  { %357 = vmatprep.subr.mxu0 %v681_v0  ;;  %675 = vmatpush2.msra.mxu1 %v1037_v8 }
  0x3d   :  { %358 = vmatpush1.msra.mxu0 %v824_v29  ;;  %645 = vmatprep.subr.mxu1 %v681_v0  ;;  %v41_v29 = vld [vmem:[%s1337_s0 + $0xd8] sm:$0xff] }
  0x3e   :  { %359 = vmatprep.subr.mxu0 %v681_v0  ;;  %676 = vmatpush2.msra.mxu1 %v1044_v9 }
  0x3f   :  { %288 = vmatprep.mubr.f32.mxu0 %v39_v10  ;;  %360 = vmatpush1.msra.mxu0 %v837_v32  ;;  %v58_v32 = vld [vmem:[%s1337_s0 + $0x160] sm:$0xff] }
  0x40   :  { %646 = vmatprep.subr.mxu1 %v681_v0  ;;  %289 = vmatmul.mubr.f32.gmra.mxu0 %v38_v11 }
  0x41   :  { %361 = vmatprep.subr.mxu0 %v681_v0  ;;  %677 = vmatpush2.msra.mxu1 %v1061_v12 }
  0x42   :  { %362 = vmatpush1.msra.mxu0 %v850_v35  ;;  %647 = vmatprep.subr.mxu1 %v681_v0  ;;  %v63_v35 = vld [vmem:[%s1337_s0 + $0x188] sm:$0xff] }
  0x43   :  { %363 = vmatprep.subr.mxu0 %v681_v0  ;;  %678 = vmatpush2.msra.mxu1 %v1068_v13 }
  0x44   :  { %293 = vmatprep.mubr.f32.mxu0 %v43_v14  ;;  %364 = vmatpush1.msra.mxu0 %v863_v38  ;;  %v48_v38 = vld [vmem:[%s1337_s0 + $0x110] sm:$0xff] }
  0x45   :  { %648 = vmatprep.subr.mxu1 %v681_v0  ;;  %294 = vmatmul.mubr.f32.gmra.mxu0 %v42_v15 }
  0x46   :  { %365 = vmatprep.subr.mxu0 %v681_v0  ;;  %679 = vmatpush2.msra.mxu1 %v1085_v16 }
  0x47   :  { %524 = vmatprep.mubr.msk.f32.mxu1 %vm141_vm1, %v29_v17  ;;  %366 = vmatpush1.msra.mxu0 %v876_v41  ;;  %v53_v41 = vld [vmem:[%s1337_s0 + $0x138] sm:$0xff] }
  0x48   :  { %419 = vmatmul.mubr.f32.vlgmr.msra.gmra.mxu1 %v28_v18  ;;  %367 = vmatprep.subr.mxu0 %v681_v0 }
  0x49   :  { %298 = vmatprep.mubr.f32.mxu0 %v47_v19  ;;  %368 = vmatpush1.msra.mxu0 %v889_v44  ;;  %v70_v44 = vld [vmem:[%s1337_s0 + $0x1c0] sm:$0xff] }
  0x4a   :  { %299 = vmatmul.mubr.f32.gmra.mxu0 %v46_v20  ;;  %369 = vmatprep.subr.mxu0 %v681_v0 }
  0x4b   :  { %525 = vmatprep.mubr.msk.f32.mxu1 %vm141_vm1, %v33_v21  ;;  %370 = vmatpush1.msra.mxu0 %v902_v47  ;;  %v75_v47 = vld [vmem:[%s1337_s0 + $0x1e8] sm:$0xff] }
  0x4c   :  { %424 = vmatmul.mubr.f32.gmra.mxu1 %v32_v22  ;;  %373 = vmatprep.subr.mxu0 %v681_v0 }
  0x4d   :  { %303 = vmatprep.mubr.f32.mxu0 %v51_v23  ;;  %520 = vmatpush2.msk.msra.mxu0 %vm190_vm0, %v919_v51  ;;  %v17_v51 = vld [vmem:[%s1337_s0 + $0x18] sm:$0xff] }
  0x4e   :  { %304 = vmatmul.mubr.f32.gmra.mxu0 %v50_v24  ;;  %375 = vmatprep.subr.mxu0 %v681_v0 }
  0x4f   :  { %526 = vmatprep.mubr.msk.f32.mxu1 %vm141_vm1, %v37_v25  ;;  %376 = vmatpush2.msra.mxu0 %v928_v53  ;;  %v65_v53 = vld [vmem:[%s1337_s0 + $0x198] sm:$0xff] }
  0x50   :  { %429 = vmatmul.mubr.f32.gmra.mxu1 %v36_v26  ;;  %377 = vmatprep.subr.mxu0 %v681_v0 }
  0x51   :  { %308 = vmatprep.mubr.f32.mxu0 %v55_v27  ;;  %378 = vmatpush2.msra.mxu0 %v940_v55  ;;  %v64_v55 = vld [vmem:[%s1337_s0 + $0x190] sm:$0xff] }
  0x52   :  { %309 = vmatmul.mubr.f32.gmra.mxu0 %v54_v28  ;;  %379 = vmatprep.subr.mxu0 %v681_v0 }
  0x53   :  { %527 = vmatprep.mubr.msk.f32.mxu1 %vm141_vm1, %v41_v29  ;;  %380 = vmatpush2.msra.mxu0 %v948_v56  ;;  %v69_v56 = vld [vmem:[%s1337_s0 + $0x1b8] sm:$0xff] }
  0x54   :  { %434 = vmatmul.mubr.f32.gmra.mxu1 %v40_v30  ;;  %381 = vmatprep.subr.mxu0 %v681_v0 }
  0x55   :  { %313 = vmatprep.mubr.f32.mxu0 %v59_v31  ;;  %382 = vmatpush2.msra.mxu0 %v965_v59  ;;  %v73_v59 = vld [vmem:[%s1337_s0 + $0x1d8] sm:$0xff] }
  0x56   :  { %314 = vmatmul.mubr.f32.gmra.mxu0 %v58_v32  ;;  %383 = vmatprep.subr.mxu0 %v681_v0 }
  0x57   :  { %528 = vmatprep.mubr.msk.f32.mxu1 %vm141_vm1, %v45_v33  ;;  %384 = vmatpush2.msra.mxu0 %v972_v60  ;;  %v24_v60 = vld [vmem:[%s1337_s0 + $0x50] sm:$0xff] }
  0x58   :  { %439 = vmatmul.mubr.f32.gmra.mxu1 %v44_v34  ;;  %385 = vmatprep.subr.mxu0 %v681_v0 }
  0x59   :  { %318 = vmatprep.mubr.f32.mxu0 %v63_v35  ;;  %386 = vmatpush2.msra.mxu0 %v989_v63  ;;  %v76_v63 = vld [vmem:[%s1337_s0 + $0x1f0] sm:$0xff] }
  0x5a   :  { %319 = vmatmul.mubr.f32.gmra.mxu0 %v62_v36  ;;  %387 = vmatprep.subr.mxu0 %v681_v0 }
  0x5b   :  { %529 = vmatprep.mubr.msk.f32.mxu1 %vm141_vm1, %v49_v37  ;;  %388 = vmatpush2.msra.mxu0 %v996_v1 }
  0x5c   :  { %444 = vmatmul.mubr.f32.gmra.mxu1 %v48_v38  ;;  %389 = vmatprep.subr.mxu0 %v681_v0 }
  0x5d   :  { %323 = vmatprep.mubr.f32.mxu0 %v67_v39  ;;  %390 = vmatpush2.msra.mxu0 %v1013_v4 }
  0x5e   :  { %324 = vmatmul.mubr.f32.gmra.mxu0 %v66_v40  ;;  %391 = vmatprep.subr.mxu0 %v681_v0 }
  0x5f   :  { %530 = vmatprep.mubr.msk.f32.mxu1 %vm141_vm1, %v53_v41  ;;  %392 = vmatpush2.msra.mxu0 %v1020_v5 }
  0x60   :  { %449 = vmatmul.mubr.f32.gmra.mxu1 %v52_v42  ;;  %393 = vmatprep.subr.mxu0 %v681_v0 }
  0x61   :  { %328 = vmatprep.mubr.f32.mxu0 %v71_v43  ;;  %394 = vmatpush2.msra.mxu0 %v1037_v8 }
  0x62   :  { %329 = vmatmul.mubr.f32.gmra.mxu0 %v70_v44  ;;  %395 = vmatprep.subr.mxu0 %v681_v0 }
  0x63   :  { %531 = vmatprep.mubr.msk.f32.mxu1 %vm141_vm1, %v57_v45  ;;  %396 = vmatpush2.msra.mxu0 %v1044_v9 }
  0x64   :  { %454 = vmatmul.mubr.f32.gmra.mxu1 %v56_v46  ;;  %397 = vmatprep.subr.mxu0 %v681_v0 }
  0x65   :  { %333 = vmatprep.mubr.f32.mxu0 %v75_v47  ;;  %398 = vmatpush2.msra.mxu0 %v1061_v12 }
  0x66   :  { %334 = vmatmul.mubr.f32.gmra.mxu0 %v74_v48  ;;  %399 = vmatprep.subr.mxu0 %v681_v0 }
  0x67   :  { %532 = vmatprep.mubr.msk.f32.mxu1 %vm141_vm1, %v61_v49  ;;  %400 = vmatpush2.msra.mxu0 %v1068_v13 }
  0x68   :  { %459 = vmatmul.mubr.f32.gmra.mxu1 %v60_v50  ;;  %401 = vmatprep.subr.mxu0 %v681_v0  ;;  %v20_v0 = vld [vmem:[%s1337_s0 + $0x30] sm:$0xff] }
  0x69   :  { %402 = vmatpush2.msra.mxu0 %v1085_v16  ;;  %521 = vmatprep.mubr.msk.f32.mxu0 %vm141_vm1, %v17_v51 }
  0x6a   :  { %404 = vmatmul.mubr.f32.vlgmr.msra.gmra.mxu0 %v16_v52  ;;  %533 = vmatprep.mubr.msk.f32.mxu1 %vm141_vm1, %v65_v53 }
  0x6b   :  { %522 = vmatprep.mubr.msk.f32.mxu0 %vm141_vm1, %v21_v54 }
  0x6c   :  { %464 = vmatmul.mubr.f32.gmra.mxu1 %v64_v55 }
  0x6d   :  { %534 = vmatprep.mubr.msk.f32.mxu1 %vm141_vm1, %v69_v56 }
  0x6e   :  { %409 = vmatmul.mubr.f32.gmra.mxu0 %v20_v0 }
  0x6f   :  { %523 = vmatprep.mubr.msk.f32.mxu0 %vm141_vm1, %v25_v57 }
  0x70   :  { %469 = vmatmul.mubr.f32.gmra.mxu1 %v68_v58 }
  0x71   :  { %535 = vmatprep.mubr.msk.f32.mxu1 %vm141_vm1, %v73_v59 }
  0x72   :  { %414 = vmatmul.mubr.f32.gmra.mxu0 %v24_v60 }
  0x74   :  { %474 = vmatmul.mubr.f32.gmra.mxu1 %v72_v61 }
  0x75   :  { %536 = vmatprep.mubr.msk.f32.mxu1 %vm141_vm1, %v77_v62 }
  0x78   :  { %479 = vmatmul.mubr.f32.gmra.mxu1 %v76_v63 }
  0xe3   :  { %v570_v1 = vpop.f32.mrf.mxu0 }
  0xe5   :  { %v571_v2 = vpop.f32.mrf.mxu0 }
  0xe6   :  { %v572_v50 = vadd.f32 %v571_v2, %v570_v1 }
  0xe7   :  { %v573_v3 = vpop.f32.mrf.mxu0 }
  0xe9   :  { %v574_v4 = vpop.f32.mrf.mxu0 }
  0xea   :  { %v575_v60 = vadd.f32 %v574_v4, %v573_v3 }
  0xec   :  { %v1287_v5 = vpop.f32.mrf.mxu0 }
  0xee   :  { %v1289_v6 = vpop.f32.mrf.mxu0 }
  0xf1   :  { %v1291_v7 = vpop.f32.mrf.mxu0 }
  0xf3   :  { %v1293_v8 = vpop.f32.mrf.mxu0 }
  0xf6   :  { %v582_v9 = vpop.f32.mrf.mxu0 }
  0xf8   :  { %v583_v10 = vpop.f32.mrf.mxu0 }
  0xf9   :  { %v584_v51 = vadd.f32 %v583_v10, %v582_v9  ;;  %v578_v9 = vadd.f32 %v1289_v6, %v1287_v5 }
  0xfb   :  { %v585_v11 = vpop.f32.mrf.mxu0 }
  0xfd   :  { %v586_v12 = vpop.f32.mrf.mxu0 }
  0xfe   :  { %v587_v57 = vadd.f32 %v586_v12, %v585_v11  ;;  %v537_v11 = vld [vmem:[%s1338_s2] ss:$0 sm:$0xff] }
 0x100   :  { %v588_v13 = vpop.f32.mrf.mxu0 }
 0x102   :  { %v589_v14 = vpop.f32.mrf.mxu0 }
 0x103   :  { %v590_v10 = vadd.f32 %v589_v14, %v588_v13 }
 0x105   :  { %v1295_v15 = vpop.f32.mrf.mxu0 }
 0x107   :  { %v1297_v16 = vpop.f32.mrf.mxu0 }
 0x108   :  { %v1299_v17 = vpop.f32.mrf.mxu1  ;;  %v593_v5 = vadd.f32 %v1297_v16, %v1295_v15 }
 0x10a   :  { %v422_v18 = vpop.f32.mrf.mxu1  ;;  %v594_v19 = vpop.f32.mrf.mxu0 }
 0x10c   :  { %v425_v20 = vpop.f32.mrf.mxu1  ;;  %v595_v21 = vpop.f32.mrf.mxu0 }
 0x10d   :  { %v426_v54 = vadd.f32 %v584_v51, %v425_v20  ;;  %v596_v55 = vadd.f32 %v595_v21, %v594_v19 }
 0x10e   :  { %v427_v22 = vpop.f32.mrf.mxu1  ;;  %v597_v23 = vpop.f32.mrf.mxu0 }
 0x110   :  { %v430_v24 = vpop.f32.mrf.mxu1  ;;  %v598_v25 = vpop.f32.mrf.mxu0 }
 0x111   :  { %v431_v18 = vadd.f32 %v587_v57, %v430_v24 }
 0x112   :  { %v432_v26 = vpop.f32.mrf.mxu1  ;;  %v600_v27 = vpop.f32.mrf.mxu0 }
 0x114   :  { %v435_v28 = vpop.f32.mrf.mxu1  ;;  %v601_v29 = vpop.f32.mrf.mxu0 }
 0x115   :  { %v436_v24 = vadd.f32 %v590_v10, %v435_v28 }
 0x116   :  { %v437_v30 = vpop.f32.mrf.mxu1  ;;  %v1301_v31 = vpop.f32.mrf.mxu0 }
 0x117   :  { %v599_v30 = vadd.f32 %v598_v25, %v597_v23 }
 0x118   :  { %v1303_v32 = vpop.f32.mrf.mxu1  ;;  %v1305_v33 = vpop.f32.mrf.mxu0 }
 0x119   :  { %v441_v28 = vadd.f32 %v593_v5, %v1303_v32 }
 0x11a   :  { %v442_v34 = vpop.f32.mrf.mxu1  ;;  %v606_v35 = vpop.f32.mrf.mxu0 }
 0x11c   :  { %v445_v36 = vpop.f32.mrf.mxu1  ;;  %v607_v37 = vpop.f32.mrf.mxu0 }
 0x11d   :  { %v608_v56 = vadd.f32 %v607_v37, %v606_v35  ;;  %v446_v61 = vadd.f32 %v596_v55, %v445_v36  ;;  %v602_v35 = vadd.f32 %v601_v29, %v600_v27  ;;  %v581_v27 = vadd.f32 %v1293_v8, %v1291_v7 }
 0x11e   :  { %v447_v38 = vpop.f32.mrf.mxu1  ;;  %v609_v39 = vpop.f32.mrf.mxu0 }
 0x120   :  { %v450_v40 = vpop.f32.mrf.mxu1  ;;  %v610_v41 = vpop.f32.mrf.mxu0 }
 0x121   :  { %v611_v34 = vadd.f32 %v610_v41, %v609_v39  ;;  %v451_v4 = vadd.f32 %v599_v30, %v450_v40 }
 0x122   :  { %v452_v42 = vpop.f32.mrf.mxu1  ;;  %v612_v43 = vpop.f32.mrf.mxu0 }
 0x124   :  { %v455_v44 = vpop.f32.mrf.mxu1  ;;  %v613_v45 = vpop.f32.mrf.mxu0 }
 0x125   :  { %v614_v36 = vadd.f32 %v613_v45, %v612_v43  ;;  %v456_v6 = vadd.f32 %v602_v35, %v455_v44  ;;  %v605_v43 = vadd.f32 %v1305_v33, %v1301_v31  ;;  %v421_v44 = vadd.f32 %v581_v27, %v1299_v17 }
 0x126   :  { %v457_v46 = vpop.f32.mrf.mxu1  ;;  %v615_v47 = vpop.f32.mrf.mxu0 }
 0x128   :  { %v460_v48 = vpop.f32.mrf.mxu1  ;;  %v616_v49 = vpop.f32.mrf.mxu0 }
 0x129   :  { %v617_v45 = vadd.f32 %v616_v49, %v615_v47  ;;  %v461_v51 = vadd.f32 %v605_v43, %v460_v48 }
 0x12a   :  { %v462_v52 = vpop.f32.mrf.mxu1  ;;  %v405_v53 = vpop.f32.mrf.mxu0 }
 0x12b   :  { %v406_v0 = vadd.f32 %v572_v50, %v405_v53  ;;  %v487_v53 = vmax.f32 %v421_v44, %v441_v28 }
 0x12c   :  { %v465_v58 = vpop.f32.mrf.mxu1  ;;  %v407_v59 = vpop.f32.mrf.mxu0 }
 0x12d   :  { %v484_v62 = vmax.f32 %v406_v0, %v426_v54  ;;  %v466_v63 = vadd.f32 %v608_v56, %v465_v58 }
 0x12e   :  { %v467_v22 = vpop.f32.mrf.mxu1  ;;  %v410_v26 = vpop.f32.mrf.mxu0 }
 0x12f   :  { %v488_v1 = vmax.f32 %v446_v61, %v466_v63  ;;  %v411_v2 = vadd.f32 %v575_v60, %v410_v26 }
 0x130   :  { %v470_v12 = vpop.f32.mrf.mxu1  ;;  %v412_v3 = vpop.f32.mrf.mxu0 }
 0x131   :  { %v492_v19 = vmax.f32 %v484_v62, %v488_v1  ;;  %v485_v20 = vmax.f32 %v411_v2, %v431_v18  ;;  %v471_v21 = vadd.f32 %v611_v34, %v470_v12 }
 0x132   :  { %v472_v23 = vpop.f32.mrf.mxu1  ;;  %v415_v25 = vpop.f32.mrf.mxu0 }
 0x133   :  { %v503_v37 = vadd.f32 %v537_v11, %v492_v19  ;;  %v489_v38 = vmax.f32 %v451_v4, %v471_v21  ;;  %v416_v39 = vadd.f32 %v578_v9, %v415_v25 }
 0x134   :  { %v475_v13 = vpop.f32.mrf.mxu1  ;;  %v417_v14 = vpop.f32.mrf.mxu0 }
 0x135   :  { %v507_v41 = vmax.f32 %v503_v37, 0.0  ;;  %v493_v40 = vmax.f32 %v485_v20, %v489_v38  ;;  %v486_v42 = vmax.f32 %v416_v39, %v436_v24  ;;  %v476_v46 = vadd.f32 %v614_v36, %v475_v13 }
 0x136   :  { %v477_v29 = vpop.f32.mrf.mxu1 }
 0x137   :  { %512 = vst.msk [vmem:[%s1339_s3] sm:$0xff] %vm511_vm2, %v507_v41  ;;  %v504_v15 = vadd.f32 %v537_v11, %v493_v40  ;;  %v490_v16 = vmax.f32 %v456_v6, %v476_v46 }
 0x138   :  { %v480_v50 = vpop.f32.mrf.mxu1 }
 0x139   :  { %v508_v52 = vmax.f32 %v504_v15, 0.0  ;;  %v494_v7 = vmax.f32 %v486_v42, %v490_v16  ;;  %v481_v8 = vadd.f32 %v617_v45, %v480_v50 }
 0x13a   :  { %v482_v32 = vpop.f32.mrf.mxu1 }
 0x13b   :  { %513 = vst.msk [vmem:[%s1339_s3 + $0x8] sm:$0xff] %vm511_vm2, %v508_v52  ;;  %v505_v31 = vadd.f32 %v537_v11, %v494_v7  ;;  %v491_v33 = vmax.f32 %v461_v51, %v481_v8 }
 0x13d   :  { %v509_v47 = vmax.f32 %v505_v31, 0.0  ;;  %v495_v49 = vmax.f32 %v487_v53, %v491_v33 }
 0x13f   :  { %514 = vst.msk [vmem:[%s1339_s3 + $0x10] sm:$0xff] %vm511_vm2, %v509_v47  ;;  %v506_v17 = vadd.f32 %v537_v11, %v495_v49 }
 0x141   :  { %v510_v48 = vmax.f32 %v506_v17, 0.0 }
 0x143   :  { %515 = vst.msk [vmem:[%s1339_s3 + $0x18] sm:$0xff] %vm511_vm2, %v510_v48 }

// kernel: convnet_forward.5
= control target key start
LH: loop header
LB: loop body
LE: loop exit
PB: predicated region body
PF: predicated region fallthrough
CT: control target
= control target key end

     0   :  { %v684_v27 = vmov 1983009808   ;;  %v116_v29 = vlaneseq  ;;  %s1054_s0 = inlined_call_operand.vmem [shape: f32[2,640], index: 0, kind: input, shape index: {}]   ;;  %s1055_s1 = inlined_call_operand.vmem [shape: f32[640,120], index: 1, kind: input, shape index: {}]   ;;  %s1056_s2 = inlined_call_operand.vmem [shape: f32[1,120], index: 2, kind: input, shape index: {}]   ;;  %s1057_s3 = inlined_call_operand.vmem [shape: f32[120,10], index: 3, kind: input, shape index: {}]   ;;  %s1058_s4 = inlined_call_operand.vmem [shape: f32[1,10], index: 4, kind: input, shape index: {}]   ;;  %s1059_s5 = inlined_call_operand.hbm [shape: f32[2,10], index: 5, kind: output, shape index: {}]  }
   0x1   :  { %v54_v0 = vld [vmem:[%s1055_s1 + $0xf8] sm:$0xff]  ;;  %v53_v2 = vld [vmem:[%s1055_s1 + $0xf0] sm:$0xff]  ;;  %v52_v6 = vld [vmem:[%s1055_s1 + $0xe8] sm:$0xff]  ;;  %v114_v28 = vunpack.c.l.s4 %v684_v27 }
   0x2   :  { %v38_v1 = vld [vmem:[%s1055_s1 + $0x78] sm:$0xff]  ;;  %482 = vmatprep.subr.mxu0 %v54_v0  ;;  %v37_v4 = vld [vmem:[%s1055_s1 + $0x70] sm:$0xff]  ;;  %v36_v8 = vld [vmem:[%s1055_s1 + $0x68] sm:$0xff]  ;;  %v117_v39 = vshrl.u32 %v116_v29, 7 }
   0x3   :  { %v86_v3 = vld [vmem:[%s1055_s1 + $0x1f8] sm:$0xff]  ;;  %483 = vmatpush3.msra.mxu0 %v38_v1  ;;  %v85_v7 = vld [vmem:[%s1055_s1 + $0x1f0] sm:$0xff]  ;;  %v84_v10 = vld [vmem:[%s1055_s1 + $0x1e8] sm:$0xff]  ;;  %v115_v38 = vunpack.c.0.s8 %v114_v28 }
   0x4   :  { %v70_v5 = vld [vmem:[%s1055_s1 + $0x178] sm:$0xff]  ;;  %517 = vmatprep.subr.mxu1 %v86_v3  ;;  %484 = vmatprep.subr.mxu0 %v53_v2  ;;  %v69_v9 = vld [vmem:[%s1055_s1 + $0x170] sm:$0xff]  ;;  %v51_v11 = vld [vmem:[%s1055_s1 + $0xe0] sm:$0xff] }
   0x5   :  { %518 = vmatpush3.msra.mxu1 %v70_v5  ;;  %485 = vmatpush3.msra.mxu0 %v37_v4  ;;  %v68_v12 = vld [vmem:[%s1055_s1 + $0x168] sm:$0xff]  ;;  %v35_v13 = vld [vmem:[%s1055_s1 + $0x60] sm:$0xff]  ;;  %v50_v15 = vld [vmem:[%s1055_s1 + $0xd8] sm:$0xff]  ;;  %v118_v48 = vsub.s32 %v115_v38, %v117_v39 }
   0x6   :  { %519 = vmatprep.subr.mxu1 %v85_v7  ;;  %486 = vmatprep.subr.mxu0 %v52_v6  ;;  %v83_v14 = vld [vmem:[%s1055_s1 + $0x1e0] sm:$0xff]  ;;  %v34_v17 = vld [vmem:[%s1055_s1 + $0x58] sm:$0xff]  ;;  %v49_v19 = vld [vmem:[%s1055_s1 + $0xd0] sm:$0xff] }
   0x7   :  { %520 = vmatpush3.msra.mxu1 %v69_v9  ;;  %487 = vmatpush3.msra.mxu0 %v36_v8  ;;  %v67_v16 = vld [vmem:[%s1055_s1 + $0x160] sm:$0xff]  ;;  %v82_v18 = vld [vmem:[%s1055_s1 + $0x1d8] sm:$0xff]  ;;  %v33_v21 = vld [vmem:[%s1055_s1 + $0x50] sm:$0xff] }
   0x8   :  { %521 = vmatprep.subr.mxu1 %v84_v10  ;;  %488 = vmatprep.subr.mxu0 %v51_v11  ;;  %v66_v20 = vld [vmem:[%s1055_s1 + $0x158] sm:$0xff]  ;;  %v81_v22 = vld [vmem:[%s1055_s1 + $0x1d0] sm:$0xff]  ;;  %v48_v23 = vld [vmem:[%s1055_s1 + $0xc8] sm:$0xff] }
   0x9   :  { %522 = vmatpush3.msra.mxu1 %v68_v12  ;;  %489 = vmatpush3.msra.mxu0 %v35_v13  ;;  %v65_v24 = vld [vmem:[%s1055_s1 + $0x150] sm:$0xff]  ;;  %v32_v25 = vld [vmem:[%s1055_s1 + $0x48] sm:$0xff]  ;;  %v47_v30 = vld [vmem:[%s1055_s1 + $0xc0] sm:$0xff] }
   0xa   :  { %523 = vmatprep.subr.mxu1 %v83_v14  ;;  %490 = vmatprep.subr.mxu0 %v50_v15  ;;  %v80_v26 = vld [vmem:[%s1055_s1 + $0x1c8] sm:$0xff]  ;;  %v31_v32 = vld [vmem:[%s1055_s1 + $0x40] sm:$0xff]  ;;  %v46_v34 = vld [vmem:[%s1055_s1 + $0xb8] sm:$0xff] }
   0xb   :  { %524 = vmatpush3.msra.mxu1 %v67_v16  ;;  %491 = vmatpush3.msra.mxu0 %v34_v17  ;;  %v64_v31 = vld [vmem:[%s1055_s1 + $0x148] sm:$0xff]  ;;  %v79_v33 = vld [vmem:[%s1055_s1 + $0x1c0] sm:$0xff]  ;;  %v30_v36 = vld [vmem:[%s1055_s1 + $0x38] sm:$0xff] }
   0xc   :  { %525 = vmatprep.subr.mxu1 %v82_v18  ;;  %492 = vmatprep.subr.mxu0 %v49_v19  ;;  %v63_v35 = vld [vmem:[%s1055_s1 + $0x140] sm:$0xff]  ;;  %v78_v37 = vld [vmem:[%s1055_s1 + $0x1b8] sm:$0xff]  ;;  %v45_v40 = vld [vmem:[%s1055_s1 + $0xb0] sm:$0xff] }
   0xd   :  { %526 = vmatpush3.msra.mxu1 %v66_v20  ;;  %493 = vmatpush3.msra.mxu0 %v33_v21  ;;  %v62_v41 = vld [vmem:[%s1055_s1 + $0x138] sm:$0xff]  ;;  %v29_v42 = vld [vmem:[%s1055_s1 + $0x30] sm:$0xff]  ;;  %v44_v44 = vld [vmem:[%s1055_s1 + $0xa8] sm:$0xff] }
   0xe   :  { %527 = vmatprep.subr.mxu1 %v81_v22  ;;  %494 = vmatprep.subr.mxu0 %v48_v23  ;;  %v77_v43 = vld [vmem:[%s1055_s1 + $0x1b0] sm:$0xff]  ;;  %v28_v46 = vld [vmem:[%s1055_s1 + $0x28] sm:$0xff]  ;;  %v43_v49 = vld [vmem:[%s1055_s1 + $0xa0] sm:$0xff] }
   0xf   :  { %528 = vmatpush3.msra.mxu1 %v65_v24  ;;  %495 = vmatpush3.msra.mxu0 %v32_v25  ;;  %v61_v45 = vld [vmem:[%s1055_s1 + $0x130] sm:$0xff]  ;;  %v76_v47 = vld [vmem:[%s1055_s1 + $0x1a8] sm:$0xff]  ;;  %v21_v51 = vld [vmem:[%s1054_s0] sm:$0xff] }
  0x10   :  { %529 = vmatprep.subr.mxu1 %v80_v26  ;;  %496 = vmatprep.subr.mxu0 %v47_v30  ;;  %v60_v50 = vld [vmem:[%s1055_s1 + $0x128] sm:$0xff]  ;;  %v27_v52 = vld [vmem:[%s1055_s1 + $0x20] sm:$0xff]  ;;  %v42_v54 = vld [vmem:[%s1055_s1 + $0x98] sm:$0xff]  ;;  %v119_v58 = vrot.slane %v21_v51, %v118_v48  ;;  %v112_v59 = vcombine.high %v21_v51, %v21_v51 }
  0x11   :  { %530 = vmatpush3.msra.mxu1 %v64_v31  ;;  %497 = vmatpush3.msra.mxu0 %v31_v32  ;;  %v75_v53 = vld [vmem:[%s1055_s1 + $0x1a0] sm:$0xff]  ;;  %v26_v56 = vld [vmem:[%s1055_s1 + $0x18] sm:$0xff]  ;;  %v41_v60 = vld [vmem:[%s1055_s1 + $0x90] sm:$0xff] }
  0x12   :  { %531 = vmatprep.subr.mxu1 %v79_v33  ;;  %498 = vmatprep.subr.mxu0 %v46_v34  ;;  %v59_v55 = vld [vmem:[%s1055_s1 + $0x120] sm:$0xff]  ;;  %v74_v57 = vld [vmem:[%s1055_s1 + $0x198] sm:$0xff]  ;;  %v25_v62 = vld [vmem:[%s1055_s1 + $0x10] sm:$0xff]  ;;  %v127_v4 = vcombine.high %v119_v58, %v119_v58  ;;  %v126_v5 = vrot.slane %v112_v59, %v118_v48 }
  0x13   :  { %532 = vmatpush3.msra.mxu1 %v63_v35  ;;  %499 = vmatpush3.msra.mxu0 %v30_v36  ;;  %v58_v61 = vld [vmem:[%s1055_s1 + $0x118] sm:$0xff]  ;;  %v73_v63 = vld [vmem:[%s1055_s1 + $0x190] sm:$0xff]  ;;  %v40_v0 = vld [vmem:[%s1055_s1 + $0x88] sm:$0xff] }
  0x14   :  { %533 = vmatprep.subr.mxu1 %v78_v37  ;;  %500 = vmatprep.subr.mxu0 %v45_v40  ;;  %v57_v1 = vld [vmem:[%s1055_s1 + $0x110] sm:$0xff]  ;;  %v24_v2 = vld [vmem:[%s1055_s1 + $0x8] sm:$0xff] }
  0x15   :  { %534 = vmatpush3.msra.mxu1 %v62_v41  ;;  %501 = vmatpush3.msra.mxu0 %v29_v42  ;;  %v72_v3 = vld [vmem:[%s1055_s1 + $0x188] sm:$0xff] }
  0x16   :  { %535 = vmatprep.subr.mxu1 %v77_v43  ;;  %502 = vmatprep.subr.mxu0 %v44_v44 }
  0x17   :  { %536 = vmatpush3.msra.mxu1 %v61_v45  ;;  %503 = vmatpush3.msra.mxu0 %v28_v46 }
  0x18   :  { %537 = vmatprep.subr.mxu1 %v76_v47  ;;  %504 = vmatprep.subr.mxu0 %v43_v49 }
  0x19   :  { %538 = vmatpush3.msra.mxu1 %v60_v50  ;;  %505 = vmatpush3.msra.mxu0 %v27_v52 }
  0x1a   :  { %539 = vmatprep.subr.mxu1 %v75_v53  ;;  %506 = vmatprep.subr.mxu0 %v42_v54 }
  0x1b   :  { %540 = vmatpush3.msra.mxu1 %v59_v55  ;;  %507 = vmatpush3.msra.mxu0 %v26_v56 }
  0x1c   :  { %541 = vmatprep.subr.mxu1 %v74_v57  ;;  %508 = vmatprep.subr.mxu0 %v41_v60 }
  0x1d   :  { %542 = vmatpush3.msra.mxu1 %v58_v61 }
  0x1e   :  { %10 = vsyncpa [#allocation3], 0  ;;  %509 = vmatpush3.msra.mxu0 %v25_v62  ;;  %543 = vmatprep.subr.mxu1 %v73_v63  ;;  %v39_v6 = vld [vmem:[%s1055_s1 + $0x80] sm:$0xff]  ;;  %v56_v8 = vld [vmem:[%s1055_s1 + $0x108] sm:$0xff]  ;;  %v128_v11 = vcombine.high %v126_v5, %v126_v5  ;;  %v685_v13 = vmov 0.0   ;;  %vm686_vm0 = vmmov 0  }
  0x1f   :  { %510 = vmatprep.subr.mxu0 %v40_v0  ;;  %544 = vmatpush3.msra.mxu1 %v57_v1  ;;  %v23_v7 = vld [vmem:[%s1055_s1] sm:$0xff]  ;;  %v102_v12 = vld [vmem:[%s1055_s1 + $0x278] sm:$0xff]  ;;  %v101_v14 = vld [vmem:[%s1055_s1 + $0x270] sm:$0xff]  ;;  %vm374_vm1 = vcmask 982016   ;;  %vm449_vm2 = vcmask 74752  }
  0x20   :  { %511 = vmatpush3.msra.mxu0 %v24_v2  ;;  %545 = vmatprep.subr.mxu1 %v72_v3  ;;  %v71_v9 = vld [vmem:[%s1055_s1 + $0x180] sm:$0xff]  ;;  %v100_v15 = vld [vmem:[%s1055_s1 + $0x268] sm:$0xff]  ;;  %v98_v17 = vld [vmem:[%s1055_s1 + $0x258] sm:$0xff] }
  0x21   :  { %512 = vmatprep.subr.mxu0 %v39_v6  ;;  %205 = vmatprep.mubr.f32.mxu0 %v127_v4  ;;  %v55_v10 = vld [vmem:[%s1055_s1 + $0x100] sm:$0xff]  ;;  %v97_v18 = vld [vmem:[%s1055_s1 + $0x250] sm:$0xff]  ;;  %v96_v19 = vld [vmem:[%s1055_s1 + $0x248] sm:$0xff] }
  0x22   :  { %513 = vmatpush3.msra.mxu0 %v23_v7  ;;  %546 = vmatpush3.msra.mxu1 %v56_v8  ;;  %v99_v16 = vld [vmem:[%s1055_s1 + $0x260] sm:$0xff]  ;;  %v94_v21 = vld [vmem:[%s1055_s1 + $0x238] sm:$0xff]  ;;  %v93_v22 = vld [vmem:[%s1055_s1 + $0x230] sm:$0xff] }
  0x23   :  { %206 = vmatmul.mubr.f32.vlgmr.msra.gmra.mxu0 %v119_v58  ;;  %547 = vmatprep.subr.mxu1 %v71_v9  ;;  %v95_v20 = vld [vmem:[%s1055_s1 + $0x240] sm:$0xff]  ;;  %v92_v23 = vld [vmem:[%s1055_s1 + $0x228] sm:$0xff]  ;;  %v90_v25 = vld [vmem:[%s1055_s1 + $0x218] sm:$0xff] }
  0x24   :  { %585 = vmatprep.subr.mxu0 %v685_v13  ;;  %548 = vmatpush3.msra.mxu1 %v55_v10  ;;  %v91_v24 = vld [vmem:[%s1055_s1 + $0x220] sm:$0xff]  ;;  %v89_v26 = vld [vmem:[%s1055_s1 + $0x210] sm:$0xff]  ;;  %v88_v27 = vld [vmem:[%s1055_s1 + $0x208] sm:$0xff] }
  0x25   :  { %275 = vmatprep.mubr.f32.mxu1 %v128_v11  ;;  %586 = vmatpush3.msra.mxu0 %v102_v12  ;;  %v87_v28 = vld [vmem:[%s1055_s1 + $0x200] sm:$0xff]  ;;  %v479_v29 = vld.sshfl [vmem:[%s1054_s0 + $0x8] sm:$0x3 pattern:$0x76325410]  ;;  %v366_v30 = vld [vmem:[%s1057_s3 + $0x70] sm:$0xff] }
  0x26   :  { %276 = vmatmul.mubr.f32.vlgmr.msra.gmra.mxu1 %v126_v5  ;;  %587 = vmatprep.subr.mxu0 %v685_v13  ;;  %v365_v31 = vld [vmem:[%s1057_s3 + $0x68] sm:$0xff]  ;;  %v364_v32 = vld [vmem:[%s1057_s3 + $0x60] sm:$0xff]  ;;  %v363_v33 = vld [vmem:[%s1057_s3 + $0x58] sm:$0xff] }
  0x27   :  { %588 = vmatpush3.msra.mxu0 %v101_v14  ;;  %617 = vmatprep.mubr.msk.f32.mxu0 %vm686_vm0, %v685_v13  ;;  %v362_v34 = vld [vmem:[%s1057_s3 + $0x50] sm:$0xff]  ;;  %v361_v35 = vld [vmem:[%s1057_s3 + $0x48] sm:$0xff]  ;;  %v360_v36 = vld [vmem:[%s1057_s3 + $0x40] sm:$0xff] }
  0x28   :  { %589 = vmatprep.subr.mxu0 %v685_v13  ;;  %620 = vmatprep.subr.mxu1 %v685_v13  ;;  %v359_v37 = vld [vmem:[%s1057_s3 + $0x38] sm:$0xff]  ;;  %v358_v38 = vld [vmem:[%s1057_s3 + $0x30] sm:$0xff]  ;;  %v357_v39 = vld [vmem:[%s1057_s3 + $0x28] sm:$0xff] }
  0x29   :  { %590 = vmatpush3.msra.mxu0 %v100_v15  ;;  %650 = vmatprep.mubr.msk.f32.mxu1 %vm686_vm0, %v685_v13  ;;  %v356_v40 = vld [vmem:[%s1057_s3 + $0x20] sm:$0xff]  ;;  %v355_v41 = vld [vmem:[%s1057_s3 + $0x18] sm:$0xff]  ;;  %v354_v42 = vld [vmem:[%s1057_s3 + $0x10] sm:$0xff] }
  0x2a   :  { %591 = vmatprep.subr.mxu0 %v685_v13  ;;  %621 = vmatpush3.msra.mxu1 %v366_v30  ;;  %v353_v43 = vld [vmem:[%s1057_s3 + $0x8] sm:$0xff]  ;;  %v352_v44 = vld [vmem:[%s1057_s3] sm:$0xff] }
  0x2b   :  { %592 = vmatpush3.msra.mxu0 %v99_v16  ;;  %622 = vmatprep.subr.mxu1 %v685_v13  ;;  %v478_v49 = vld [vmem:[%s1056_s2] ss:$0 sm:$0xff]  ;;  %s687_s2 = smov [#allocation2]  }
  0x2c   :  { %593 = vmatprep.subr.mxu0 %v685_v13  ;;  %623 = vmatpush3.msra.mxu1 %v365_v31  ;;  %v480_v58 = vld [vmem:[%s1058_s4] ss:$0 sm:$0xff]  ;;  %s470_s4 = sshll.u32 %s687_s2, 4  ;;  %s471_s4 = int_to_ptr.vmem [resolvable:$true] %s470_s4 }
  0x2d   :  { %594 = vmatpush3.msra.mxu0 %v98_v17  ;;  %624 = vmatprep.subr.mxu1 %v685_v13  ;;  %s662_s0 = scalar_lea.vmem %s471_s4, 32  ;;  %p667_p1 = scmp.lt.s32.totalorder %s471_s4, %s471_s4 }
  0x2e   :  { %595 = vmatprep.subr.mxu0 %v685_v13  ;;  %625 = vmatpush3.msra.mxu1 %v364_v32  ;;  %p663_p0 = scmp.ne.s32.totalorder %s471_s4, %s662_s0  ;;  %p668_p2 = scmp.lt.s32.totalorder %s662_s0, %s662_s0 }
  0x2f   :  { %596 = vmatpush3.msra.mxu0 %v97_v18  ;;  %626 = vmatprep.subr.mxu1 %v685_v13 }
  0x30   :  { %597 = vmatprep.subr.mxu0 %v685_v13  ;;  %627 = vmatpush3.msra.mxu1 %v363_v33  ;;  %p669_p3 = por %p668_p2, %p667_p1 }
  0x31   :  { %598 = vmatpush3.msra.mxu0 %v96_v19  ;;  %628 = vmatprep.subr.mxu1 %v685_v13 }
  0x32   :  { %599 = vmatprep.subr.mxu0 %v685_v13  ;;  %629 = vmatpush3.msra.mxu1 %v362_v34  ;;  %p670_p4 = pnand %p669_p3, %p663_p0 }
  0x33   :  { %600 = vmatpush3.msra.mxu0 %v95_v20  ;;  %630 = vmatprep.subr.mxu1 %v685_v13 }
  0x34   :  { %601 = vmatprep.subr.mxu0 %v685_v13  ;;  %631 = vmatpush3.msra.mxu1 %v361_v35 }
  0x35   :  { %602 = vmatpush3.msra.mxu0 %v94_v21  ;;  %632 = vmatprep.subr.mxu1 %v685_v13 }
  0x36   :  { %603 = vmatprep.subr.mxu0 %v685_v13  ;;  %633 = vmatpush3.msra.mxu1 %v360_v36 }
  0x37   :  { %604 = vmatpush3.msra.mxu0 %v93_v22  ;;  %634 = vmatprep.subr.mxu1 %v685_v13 }
  0x38   :  { %605 = vmatprep.subr.mxu0 %v685_v13  ;;  %635 = vmatpush3.msra.mxu1 %v359_v37 }
  0x39   :  { %606 = vmatpush3.msra.mxu0 %v92_v23  ;;  %636 = vmatprep.subr.mxu1 %v685_v13 }
  0x3a   :  { %607 = vmatprep.subr.mxu0 %v685_v13  ;;  %637 = vmatpush3.msra.mxu1 %v358_v38 }
  0x3b   :  { %608 = vmatpush3.msra.mxu0 %v91_v24  ;;  %638 = vmatprep.subr.mxu1 %v685_v13 }
  0x3c   :  { %609 = vmatprep.subr.mxu0 %v685_v13  ;;  %639 = vmatpush3.msra.mxu1 %v357_v39 }
  0x3d   :  { %610 = vmatpush3.msra.mxu0 %v90_v25  ;;  %640 = vmatprep.subr.mxu1 %v685_v13 }
  0x3e   :  { %611 = vmatprep.subr.mxu0 %v685_v13  ;;  %641 = vmatpush3.msra.mxu1 %v356_v40 }
  0x3f   :  { %612 = vmatpush3.msra.mxu0 %v89_v26  ;;  %642 = vmatprep.subr.mxu1 %v685_v13 }
  0x40   :  { %613 = vmatprep.subr.mxu0 %v685_v13  ;;  %643 = vmatpush3.msra.mxu1 %v355_v41 }
  0x41   :  { %614 = vmatpush3.msra.mxu0 %v88_v27  ;;  %644 = vmatprep.subr.mxu1 %v685_v13 }
  0x42   :  { %615 = vmatprep.subr.mxu0 %v685_v13  ;;  %645 = vmatpush3.msra.mxu1 %v354_v42 }
  0x43   :  { %616 = vmatpush3.msra.mxu0 %v87_v28  ;;  %646 = vmatprep.subr.mxu1 %v685_v13 }
  0x44   :  { %618 = vmatmul.mubr.f32.vlgmr.msra.gmra.mxu0 %v479_v29  ;;  %647 = vmatpush3.msra.mxu1 %v353_v43 }
  0x45   :  { %648 = vmatprep.subr.mxu1 %v685_v13 }
  0x46   :  { %649 = vmatpush3.msra.mxu1 %v352_v44 }
  0xe3   :  { %v514_v45 = vpop.f32.mrf.mxu0 }
  0xe5   :  { %v515_v46 = vpop.f32.mrf.mxu0 }
  0xe6   :  { %v549_v47 = vpop.f32.mrf.mxu1  ;;  %v516_v48 = vadd.f32 %v515_v46, %v514_v45 }
  0xe8   :  { %v550_v50 = vpop.f32.mrf.mxu1  ;;  %v208_v51 = vadd.f32 %v516_v48, %v478_v49 }
  0xe9   :  { %v551_v52 = vadd.f32 %v550_v50, %v549_v47 }
  0xeb   :  { %v278_v53 = vadd.f32 %v551_v52, %v208_v51 }
 0x104   :  { %v347_v54 = vpop.f32.mrf.mxu0 }
 0x105   :  { %v348_v55 = vadd.f32 %v347_v54, %v278_v53 }
 0x106   :  { %v619_v56 = vpop.f32.mrf.mxu0 }
 0x107   :  { %v351_v57 = vmax.f32 %v348_v55, 0.0 }
 0x109   :  { %651 = vmatmul.mubr.msk.f32.vlgmr.msra.gmra.mxu1 %vm374_vm1, %v351_v57 }
 0x1c9   :  { %v444_v59 = vpop.f32.mrf.mxu1 }
 0x1ca   :  { %v445_v60 = vadd.f32 %v480_v58, %v444_v59 }
 0x1cb   :  { %v652_v61 = vpop.f32.mrf.mxu1 }
 0x1cc   :  { %v448_v62 = vmax.f32 %v445_v60, 0.0 }
 0x1ce   :  { %v450_v63 = vsel %vm449_vm2, %v448_v62, -inf }
 0x1cf   :  { %451 = vmax.xlane.f32.xlu0 %v450_v63 }
 0x258   :  { %v452_v0 = vpop.xlane.xlu0 %451 }
 0x259   :  { %v453_v1 = vsub.f32 %v448_v62, %v452_v0 }
 0x25b   :  { %v454_v2 = vmul.f32 1.442695, %v453_v1 }
 0x25d   :  { %658 = vpow2.f32 %v454_v2 }
 0x26a   :  { %v659_v3 = vpop.eup %658 }
 0x26b   :  { %v456_v4 = vsel %vm449_vm2, %v659_v3, 0.0 }
 0x26c   :  { %457 = vadd.xlane.f32.xlu0 %v456_v4 }
 0x2f5   :  { %v458_v5 = vpop.xlane.xlu0 %457 }
 0x2f6   :  { %660 = vlog2.f32 %v458_v5 }
 0x303   :  { %v661_v6 = vpop.eup %660 }
 0x304   :  { %v460_v7 = vmul.f32 0.6931472, %v661_v6 }
 0x306   :  { %v461_v8 = vadd.f32 %v460_v7, %v452_v0 }
 0x308   :  { %v462_v9 = vsub.f32 %v448_v62, %v461_v8 }
 0x30a   :  { %463 = vst.msk [vmem:[#allocation2] sm:$0x3] %vm449_vm2, %v462_v9 }
 0x30b   :  { %673 = shalt.err (!%p670_p4)
}
 0x30c   :  { %473 = dma.vmem_to_hbm [thread:$0]  %s471_s4, 32, %s1059_s5, [#allocation3]  }
 0x30d   :  { %682 = dma.done.wait [#allocation3], 32  }
 0x30e   :  { %683 = vsyncadd [#allocation3], 4294967264 }
 0x30f   :  { %477 = vsyncpa [#allocation3], 1 }

</bundles_post_ra>
